<compile_context>
chip_gen: v5e
topology: v5e:2x2
jax: 0.10.0
libtpu: 0.0.40
codegen_flags: <defaults>
</compile_context>

<pallas_src>
import functools

import jax
import jax.numpy as jnp
import numpy as np
from jax.experimental import pallas as pl
from jax.experimental.pallas import tpu as pltpu

# 48 MiB: well above the scoped defaults, and leaves headroom on v7x (64 MiB
# physical per core) for double-buffering / internal scratch.
_VMEM_LIMIT = 48 * 1024 * 1024
_TM_TARGET = 512                 # row-tile target for the 1x1-conv matmuls


# ------------------------------ tiling helpers ------------------------------

def _round_up(x, m):
    return (x + m - 1) // m * m


def _row_tile(m):
    return min(_TM_TARGET, _round_up(m, 128))


def _col_tile(n):
    # Keep output stores lane-dense (multiple of 128) when the channel count
    # allows.  TODO(synk): pad <128-channel outputs up to 128 lanes.
    if n % 256 == 0:
        return 256
    if n % 128 == 0:
        return 128
    return n


def _cparams(*sem):
    return pltpu.CompilerParams(dimension_semantics=sem,
                                vmem_limit_bytes=_VMEM_LIMIT)


# ------------------------------ Pallas kernels ------------------------------

def _fused_conv12_kernel(x_ref, w1_ref, b1_ref, w2_ref, b2_ref, lm_ref, rm_ref,
                         o_ref, ybuf_ref, *, H, W, cap):
    """conv1(1x1)+BN+ReLU fused with conv2(3x3,'same')+BN+ReLU, one image."""
    HW = H * W
    # ---- conv1: 1x1 conv + folded BN + ReLU, result stays in VMEM ----------
    xb = x_ref[0].astype(jnp.bfloat16)                       # (HW, Cin)
    y1 = jnp.dot(xb, w1_ref[...], preferred_element_type=jnp.float32)
    y1 = jnp.maximum(y1 + b1_ref[...], 0.0).astype(jnp.bfloat16)   # (HW, Cmid)

    # ---- stage a zero-extended flat copy in VMEM (padding never hits HBM) --
    ybuf_ref[...] = jnp.zeros_like(ybuf_ref)
    ybuf_ref[cap:cap + HW, :] = y1          # 'cap' is 16-aligned -> aligned store
    yb = ybuf_ref[...]
    lm = lm_ref[...]                        # 0 where w == 0     (left border)
    rm = rm_ref[...]                        # 0 where w == W - 1 (right border)

    # ---- conv2: 9 accumulating MXU dots over row-shifted flat views --------
    cmid = w2_ref.shape[-1]
    acc = jnp.zeros((HW, cmid), jnp.float32)
    for di in range(3):
        for dj in range(3):
            delta = (di - 1) * W + (dj - 1)
            patch = yb[cap + delta:cap + delta + HW, :]       # (HW, Cmid)
            if dj == 0:                  # reads column w-1: invalid at w == 0
                patch = patch * lm
            elif dj == 2:                # reads column w+1: invalid at w == W-1
                patch = patch * rm
            acc = acc + jnp.dot(patch, w2_ref[3 * di + dj],
                                preferred_element_type=jnp.float32)
    y2 = jnp.maximum(acc + b2_ref[...], 0.0)
    o_ref[0] = y2.astype(o_ref.dtype)


def _final_downsample_kernel(y_ref, w3_ref, b3_ref, xi_ref, wd_ref, bd_ref, o_ref):
    # out = relu(y @ w3' + b3 + idn @ wd' + bd) — downsample conv+BN fused in.
    acc = jnp.dot(y_ref[...], w3_ref[...], preferred_element_type=jnp.float32)
    acc = acc + jnp.dot(xi_ref[...], wd_ref[...], preferred_element_type=jnp.float32)
    acc = acc + b3_ref[...] + bd_ref[...]
    o_ref[...] = jnp.maximum(acc, 0.0).astype(o_ref.dtype)


def _final_identity_kernel(y_ref, w3_ref, b3_ref, res_ref, o_ref):
    # out = relu(y @ w3' + b3 + residual)
    acc = jnp.dot(y_ref[...], w3_ref[...], preferred_element_type=jnp.float32)
    acc = acc + b3_ref[...] + res_ref[...].astype(jnp.float32)
    o_ref[...] = jnp.maximum(acc, 0.0).astype(o_ref.dtype)


# ------------------------------ kernel wrappers ------------------------------

def fused_conv12(x_flat, w1, b1, w2, b2, left_mask, right_mask, *, H, W,
                 out_dtype=jnp.bfloat16):
    """Pallas: relu(BN(conv2_3x3(relu(BN(conv1_1x1(x)))))) per image."""
    n, hw, cin = x_flat.shape
    cmid = w2.shape[-1]
    cap = _round_up(W + 1, 16)           # front zero-cap (sublane aligned)
    rows = cap + hw + W + 1              # [zeros | image | zeros]
    return pl.pallas_call(
        functools.partial(_fused_conv12_kernel, H=H, W=W, cap=cap),
        out_shape=jax.ShapeDtypeStruct((n, hw, cmid), out_dtype),
        grid=(n,),
        in_specs=[
            pl.BlockSpec((1, hw, cin), lambda b: (b, 0, 0)),
            pl.BlockSpec((cin, cmid), lambda b: (0, 0)),
            pl.BlockSpec((1, cmid), lambda b: (0, 0)),
            pl.BlockSpec((9, cmid, cmid), lambda b: (0, 0, 0)),
            pl.BlockSpec((1, cmid), lambda b: (0, 0)),
            pl.BlockSpec((hw, 1), lambda b: (0, 0)),
            pl.BlockSpec((hw, 1), lambda b: (0, 0)),
        ],
        out_specs=pl.BlockSpec((1, hw, cmid), lambda b: (b, 0, 0)),
        scratch_shapes=[pltpu.VMEM((rows, cmid), jnp.bfloat16)],
        compiler_params=_cparams("parallel"),
    )(x_flat, w1, b1, w2, b2, left_mask, right_mask)


def final_matmul_residual(y, w3, b3, idn, wd=None, bd=None, *,
                          out_dtype=jnp.float32):
    """Pallas: relu(y @ w3' + b3 + (idn @ wd' + bd  |  idn))."""
    m, k3 = y.shape
    n = w3.shape[1]
    tm = _row_tile(m)
    tn = _col_tile(n)
    mp = _round_up(m, tm)
    if mp != m:
        y = jnp.pad(y, ((0, mp - m), (0, 0)))
        idn = jnp.pad(idn, ((0, mp - m), (0, 0)))
    cp = _cparams("parallel", "parallel")
    if wd is not None:
        kd = idn.shape[1]
        out = pl.pallas_call(
            _final_downsample_kernel,
            out_shape=jax.ShapeDtypeStruct((mp, n), out_dtype),
            grid=(mp // tm, n // tn),
            in_specs=[
                pl.BlockSpec((tm, k3), lambda i, j: (i, 0)),
                pl.BlockSpec((k3, tn), lambda i, j: (0, j)),
                pl.BlockSpec((1, tn), lambda i, j: (0, j)),
                pl.BlockSpec((tm, kd), lambda i, j: (i, 0)),
                pl.BlockSpec((kd, tn), lambda i, j: (0, j)),
                pl.BlockSpec((1, tn), lambda i, j: (0, j)),
            ],
            out_specs=pl.BlockSpec((tm, tn), lambda i, j: (i, j)),
            compiler_params=cp,
        )(y, w3, b3, idn, wd, bd)
    else:
        out = pl.pallas_call(
            _final_identity_kernel,
            out_shape=jax.ShapeDtypeStruct((mp, n), out_dtype),
            grid=(mp // tm, n // tn),
            in_specs=[
                pl.BlockSpec((tm, k3), lambda i, j: (i, 0)),
                pl.BlockSpec((k3, tn), lambda i, j: (0, j)),
                pl.BlockSpec((1, tn), lambda i, j: (0, j)),
                pl.BlockSpec((tm, tn), lambda i, j: (i, j)),
            ],
            out_specs=pl.BlockSpec((tm, tn), lambda i, j: (i, j)),
            compiler_params=cp,
        )(y, w3, b3, idn)
    return out[:m] if mp != m else out


# --------------------------------- JAX glue ---------------------------------

def avg_pool(x_nhwc, s):
    n, h, w, c = x_nhwc.shape
    xr = x_nhwc.reshape(n, h // s, s, w // s, s, c).astype(jnp.float32)
    return xr.mean(axis=(2, 4)).astype(x_nhwc.dtype)


def im2col3x3(x_nhwc):
    # Reference-only (the Pallas path never materializes im2col).
    n, h, w, c = x_nhwc.shape
    xp = jnp.pad(x_nhwc, ((0, 0), (1, 1), (1, 1), (0, 0)))
    patches = [xp[:, di:di + h, dj:dj + w, :]
               for di in range(3) for dj in range(3)]
    return jnp.concatenate(patches, axis=-1)  # [n, h, w, 9*c]


# ------------------------------ parameter init ------------------------------

def init_params(key, in_planes, out_planes, stride, expansion=4, eps=1e-5):
    def conv(k, fan_in, shape):
        return jax.random.normal(k, shape, jnp.float32) * np.sqrt(2.0 / fan_in)

    def bn(k, c):
        kg, kb, km, kv = jax.random.split(k, 4)
        gamma = 1.0 + 0.1 * jax.random.normal(kg, (c,), jnp.float32)
        beta = 0.1 * jax.random.normal(kb, (c,), jnp.float32)
        mean = 0.1 * jax.random.normal(km, (c,), jnp.float32)
        var = jax.random.uniform(kv, (c,), jnp.float32, minval=0.5, maxval=1.5)
        scale = gamma / jnp.sqrt(var + eps)          # BN folded (eval mode)
        bias = beta - mean * scale
        return scale.reshape(1, -1), bias.reshape(1, -1)

    cmid = out_planes
    cout = out_planes * expansion
    ks = jax.random.split(key, 8)
    p = {}
    p["w1"] = conv(ks[0], in_planes, (in_planes, cmid))            # 1x1 conv
    p["s1"], p["b1"] = bn(ks[1], cmid)
    p["w2"] = conv(ks[2], 9 * cmid, (3, 3, cmid, cmid))            # 3x3 conv
    p["s2"], p["b2"] = bn(ks[3], cmid)
    p["w3"] = conv(ks[4], cmid, (cmid, cout))                      # 1x1 conv
    p["s3"], p["b3"] = bn(ks[5], cout)
    if stride > 1 or in_planes != cout:
        p["wd"] = conv(ks[6], in_planes, (in_planes, cout))        # downsample 1x1
        p["sd"], p["bd"] = bn(ks[7], cout)
    else:
        p["wd"] = None
    return p


def fold_bn_into_weights(p):
    """Fold per-channel BN scale into conv weight columns (host-side) and cast
    weights to bf16 for the MXU; biases stay f32 for the f32 epilogue."""
    cmid = p["w2"].shape[2]
    kp = {
        "w1": (p["w1"] * p["s1"]).astype(jnp.bfloat16),
        "b1": p["b1"],
        "w2": (p["w2"] * p["s2"]).astype(jnp.bfloat16).reshape(9, cmid, -1),
        "b2": p["b2"],
        "w3": (p["w3"] * p["s3"]).astype(jnp.bfloat16),
        "b3": p["b3"],
    }
    if p["wd"] is not None:
        kp["wd"] = (p["wd"] * p["sd"]).astype(jnp.bfloat16)
        kp["bd"] = p["bd"]
    else:
        kp["wd"] = None
    return kp


# ------------------------------- forward pass -------------------------------

def bottleneck_forward(params, x_nchw, stride):
    kp = fold_bn_into_weights(params)
    n, cin, h, w = x_nchw.shape
    cmid = kp["w1"].shape[1]
    cout = kp["w3"].shape[1]
    hw = h * w

    # Single relayout pass: NCHW f32 -> NHWC bf16.  The bf16 cast rides the
    # mandatory transpose so there is no standalone cast pass, and both the
    # first kernel and the residual read half the HBM bytes.
    x_nhwc = jnp.transpose(x_nchw, (0, 2, 3, 1)).astype(jnp.bfloat16)
    x_flat = x_nhwc.reshape(n, hw, cin)

    # Column-border masks for the fused 3x3 conv (tiny, per-row constants).
    wpos = jnp.arange(hw, dtype=jnp.int32) % w
    left_mask = (wpos != 0).astype(jnp.bfloat16).reshape(hw, 1)
    right_mask = (wpos != w - 1).astype(jnp.bfloat16).reshape(hw, 1)

    # conv1(1x1)+BN+ReLU fused with conv2(3x3)+BN+ReLU — the conv1 activation
    # and the zero padding live only in VMEM.
    y = fused_conv12(x_flat, kp["w1"], kp["b1"], kp["w2"], kp["b2"],
                     left_mask, right_mask, H=h, W=w)          # (n, hw, cmid) bf16

    # AvgPool2d(stride) (identity if stride == 1).
    if stride > 1:
        y = avg_pool(y.reshape(n, h, w, cmid), stride)
        ho, wo = h // stride, w // stride
        y = y.reshape(n, ho * wo, cmid)
    else:
        ho, wo = h, w
    m2 = n * ho * wo
    y2 = y.reshape(m2, cmid)

    # conv3(1x1)+BN fused with residual add (+ downsample conv+BN) + ReLU.
    if kp["wd"] is not None:
        idn = x_nhwc if stride == 1 else avg_pool(x_nhwc, stride)
        out = final_matmul_residual(y2, kp["w3"], kp["b3"],
                                    idn.reshape(m2, cin), kp["wd"], kp["bd"])
    else:
        out = final_matmul_residual(y2, kp["w3"], kp["b3"],
                                    x_flat.reshape(m2, cout))
    out = out.reshape(n, ho, wo, cout)
    return jnp.transpose(out, (0, 3, 1, 2))            # NHWC -> NCHW


# ---------------------------- pure-JAX reference -----------------------------

def _ref_mm_bn(x, w, scale, bias, relu):
    y = (x @ w) * scale + bias
    return jnp.maximum(y, 0.0) if relu else y


def reference_forward(params, x_nchw, stride):
    x = jnp.transpose(x_nchw, (0, 2, 3, 1))
    n, h, w, cin = x.shape
    cmid = params["w1"].shape[1]
    cout = params["w3"].shape[1]
    m = n * h * w
    y = _ref_mm_bn(x.reshape(m, cin), params["w1"], params["s1"], params["b1"],
                   True).reshape(n, h, w, cmid)
    y = _ref_mm_bn(im2col3x3(y).reshape(m, 9 * cmid),
                   params["w2"].reshape(9 * cmid, cmid),
                   params["s2"], params["b2"], True).reshape(n, h, w, cmid)
    if stride > 1:
        y = avg_pool(y, stride)
    nh, nw = y.shape[1], y.shape[2]
    m2 = n * nh * nw
    if params["wd"] is not None:
        idn = x if stride == 1 else avg_pool(x, stride)
        idn = _ref_mm_bn(idn.reshape(m2, cin), params["wd"], params["sd"],
                         params["bd"], False)
    else:
        idn = x.reshape(m2, cin)
    out = _ref_mm_bn(y.reshape(m2, cmid), params["w3"], params["s3"],
                     params["b3"], False) + idn
    out = jnp.maximum(out, 0.0).reshape(n, nh, nw, cout)
    return jnp.transpose(out, (0, 3, 1, 2))


# ----------------------------------- main ------------------------------------

if __name__ == "__main__":
    N, in_planes, H, W = 2, 16, 8, 8
    out_planes, stride = 8, 2                    # -> out channels 32, 4x4 spatial

    key = jax.random.PRNGKey(0)
    k_x, k_p = jax.random.split(key)
    x = jax.random.normal(k_x, (N, in_planes, H, W), dtype=jnp.float32)
    params = init_params(k_p, in_planes, out_planes, stride)

    fwd = jax.jit(functools.partial(bottleneck_forward, stride=stride))
    out = jax.block_until_ready(fwd(params, x))
    assert out.shape == (N, out_planes * 4, H // stride, W // stride), out.shape

    ref = reference_forward(params, x, stride)
    np.testing.assert_allclose(np.asarray(out), np.asarray(ref),
                               rtol=5e-2, atol=5e-2)
    print("KERNEL_OK")
</pallas_src>

<mosaic_0001>
module attributes {stable_mosaic.version = 11 : i64} {
  func.func @_fused_conv12_kernel(%arg0: i32, %arg1: memref<1x64x16xbf16, #tpu.memory_space<vmem>>, %arg2: memref<16x8xbf16, #tpu.memory_space<vmem>>, %arg3: memref<1x8xf32, #tpu.memory_space<vmem>>, %arg4: memref<9x8x8xbf16, #tpu.memory_space<vmem>>, %arg5: memref<1x8xf32, #tpu.memory_space<vmem>>, %arg6: memref<64x1xbf16, #tpu.memory_space<vmem>>, %arg7: memref<64x1xbf16, #tpu.memory_space<vmem>>, %arg8: memref<1x64x8xbf16, #tpu.memory_space<vmem>>, %arg9: memref<89x8xbf16, #tpu.memory_space<vmem>>) attributes {dimension_semantics = [#tpu.dimension_semantics<parallel>], iteration_bounds = array<i64: 2>, scalar_prefetch = 0 : i64, scratch_operands = 1 : i64, tpu.core_type = #tpu.core_type<tc>, window_params = [{transform_indices = @transform_0, window_bounds = array<i64: 1, 64, 16>}, {pipeline_mode = #tpu.pipeline_mode<synchronous>, transform_indices = @transform_1, window_bounds = array<i64: 16, 8>}, {pipeline_mode = #tpu.pipeline_mode<synchronous>, transform_indices = @transform_2, window_bounds = array<i64: 1, 8>}, {pipeline_mode = #tpu.pipeline_mode<synchronous>, transform_indices = @transform_3, window_bounds = array<i64: 9, 8, 8>}, {pipeline_mode = #tpu.pipeline_mode<synchronous>, transform_indices = @transform_4, window_bounds = array<i64: 1, 8>}, {pipeline_mode = #tpu.pipeline_mode<synchronous>, transform_indices = @transform_5, window_bounds = array<i64: 64, 1>}, {pipeline_mode = #tpu.pipeline_mode<synchronous>, transform_indices = @transform_6, window_bounds = array<i64: 64, 1>}, {transform_indices = @transform_7, window_bounds = array<i64: 1, 64, 8>}]} {
    %c0 = arith.constant 0 : index
    %c0_0 = arith.constant 0 : index
    %c0_1 = arith.constant 0 : index
    %0 = vector.load %arg1[%c0, %c0_0, %c0_1] : memref<1x64x16xbf16, #tpu.memory_space<vmem>>, vector<1x64x16xbf16>
    %1 = vector.shape_cast %0 : vector<1x64x16xbf16> to vector<64x16xbf16>
    %c0_2 = arith.constant 0 : index
    %c0_3 = arith.constant 0 : index
    %2 = vector.load %arg2[%c0_2, %c0_3] : memref<16x8xbf16, #tpu.memory_space<vmem>>, vector<16x8xbf16>
    %cst = arith.constant dense<0.000000e+00> : vector<64x8xf32>
    %3 = tpu.matmul %1, %2, %cst {dimension_numbers = #tpu.dot_dimension_numbers<[1], [0], [0], [1], [0, 0, 1, 1], [], []>} : vector<64x16xbf16>, vector<16x8xbf16>, vector<64x8xf32> -> vector<64x8xf32>
    %c0_4 = arith.constant 0 : index
    %c0_5 = arith.constant 0 : index
    %4 = vector.load %arg3[%c0_4, %c0_5] : memref<1x8xf32, #tpu.memory_space<vmem>>, vector<1x8xf32>
    %5 = vector.broadcast %4 : vector<1x8xf32> to vector<64x8xf32>
    %6 = arith.addf %3, %5 : vector<64x8xf32>
    %cst_6 = arith.constant 0.000000e+00 : f32
    %7 = vector.broadcast %cst_6 : f32 to vector<64x8xf32>
    %8 = arith.maximumf %6, %7 : vector<64x8xf32>
    %9 = arith.truncf %8 : vector<64x8xf32> to vector<64x8xbf16>
    %cst_7 = arith.constant 0.000000e+00 : bf16
    %10 = vector.broadcast %cst_7 : bf16 to vector<89x8xbf16>
    %c0_8 = arith.constant 0 : index
    %c0_9 = arith.constant 0 : index
    %11 = vector.load %arg9[%c0_8, %c0_9] : memref<89x8xbf16, #tpu.memory_space<vmem>>, vector<89x8xbf16>
    tpu.vector_store %arg9[%c0_8, %c0_9], %10 {strides = array<i32>} : memref<89x8xbf16, #tpu.memory_space<vmem>>, vector<89x8xbf16>,
    %c16 = arith.constant 16 : index
    %c0_10 = arith.constant 0 : index
    %12 = vector.load %arg9[%c16, %c0_10] : memref<89x8xbf16, #tpu.memory_space<vmem>>, vector<64x8xbf16>
    tpu.vector_store %arg9[%c16, %c0_10], %9 {strides = array<i32>} : memref<89x8xbf16, #tpu.memory_space<vmem>>, vector<64x8xbf16>,
    %c0_11 = arith.constant 0 : index
    %c0_12 = arith.constant 0 : index
    %13 = vector.load %arg9[%c0_11, %c0_12] : memref<89x8xbf16, #tpu.memory_space<vmem>>, vector<89x8xbf16>
    %c0_13 = arith.constant 0 : index
    %c0_14 = arith.constant 0 : index
    %14 = vector.load %arg6[%c0_13, %c0_14] : memref<64x1xbf16, #tpu.memory_space<vmem>>, vector<64x1xbf16>
    %c0_15 = arith.constant 0 : index
    %c0_16 = arith.constant 0 : index
    %15 = vector.load %arg7[%c0_15, %c0_16] : memref<64x1xbf16, #tpu.memory_space<vmem>>, vector<64x1xbf16>
    %cst_17 = arith.constant 0.000000e+00 : f32
    %16 = vector.broadcast %cst_17 : f32 to vector<64x8xf32>
    %17 = vector.extract_strided_slice %13 {offsets = [7, 0], sizes = [64, 8], strides = [1, 1]} : vector<89x8xbf16> to vector<64x8xbf16>
    %18 = vector.broadcast %14 : vector<64x1xbf16> to vector<64x8xbf16>
    %19 = arith.mulf %17, %18 : vector<64x8xbf16>
    %c0_18 = arith.constant 0 : index
    %c0_19 = arith.constant 0 : index
    %c0_20 = arith.constant 0 : index
    %20 = vector.load %arg4[%c0_18, %c0_19, %c0_20] : memref<9x8x8xbf16, #tpu.memory_space<vmem>>, vector<1x8x8xbf16>
    %21 = vector.shape_cast %20 : vector<1x8x8xbf16> to vector<8x8xbf16>
    %cst_21 = arith.constant dense<0.000000e+00> : vector<64x8xf32>
    %22 = tpu.matmul %19, %21, %cst_21 {dimension_numbers = #tpu.dot_dimension_numbers<[1], [0], [0], [1], [0, 0, 1, 1], [], []>} : vector<64x8xbf16>, vector<8x8xbf16>, vector<64x8xf32> -> vector<64x8xf32>
    %23 = arith.addf %16, %22 : vector<64x8xf32>
    %24 = vector.extract_strided_slice %13 {offsets = [8, 0], sizes = [64, 8], strides = [1, 1]} : vector<89x8xbf16> to vector<64x8xbf16>
    %c1 = arith.constant 1 : index
    %c0_22 = arith.constant 0 : index
    %c0_23 = arith.constant 0 : index
    %25 = vector.load %arg4[%c1, %c0_22, %c0_23] : memref<9x8x8xbf16, #tpu.memory_space<vmem>>, vector<1x8x8xbf16>
    %26 = vector.shape_cast %25 : vector<1x8x8xbf16> to vector<8x8xbf16>
    %cst_24 = arith.constant dense<0.000000e+00> : vector<64x8xf32>
    %27 = tpu.matmul %24, %26, %cst_24 {dimension_numbers = #tpu.dot_dimension_numbers<[1], [0], [0], [1], [0, 0, 1, 1], [], []>} : vector<64x8xbf16>, vector<8x8xbf16>, vector<64x8xf32> -> vector<64x8xf32>
    %28 = arith.addf %23, %27 : vector<64x8xf32>
    %29 = vector.extract_strided_slice %13 {offsets = [9, 0], sizes = [64, 8], strides = [1, 1]} : vector<89x8xbf16> to vector<64x8xbf16>
    %30 = vector.broadcast %15 : vector<64x1xbf16> to vector<64x8xbf16>
    %31 = arith.mulf %29, %30 : vector<64x8xbf16>
    %c2 = arith.constant 2 : index
    %c0_25 = arith.constant 0 : index
    %c0_26 = arith.constant 0 : index
    %32 = vector.load %arg4[%c2, %c0_25, %c0_26] : memref<9x8x8xbf16, #tpu.memory_space<vmem>>, vector<1x8x8xbf16>
    %33 = vector.shape_cast %32 : vector<1x8x8xbf16> to vector<8x8xbf16>
    %cst_27 = arith.constant dense<0.000000e+00> : vector<64x8xf32>
    %34 = tpu.matmul %31, %33, %cst_27 {dimension_numbers = #tpu.dot_dimension_numbers<[1], [0], [0], [1], [0, 0, 1, 1], [], []>} : vector<64x8xbf16>, vector<8x8xbf16>, vector<64x8xf32> -> vector<64x8xf32>
    %35 = arith.addf %28, %34 : vector<64x8xf32>
    %36 = vector.extract_strided_slice %13 {offsets = [15, 0], sizes = [64, 8], strides = [1, 1]} : vector<89x8xbf16> to vector<64x8xbf16>
    %37 = vector.broadcast %14 : vector<64x1xbf16> to vector<64x8xbf16>
    %38 = arith.mulf %36, %37 : vector<64x8xbf16>
    %c3 = arith.constant 3 : index
    %c0_28 = arith.constant 0 : index
    %c0_29 = arith.constant 0 : index
    %39 = vector.load %arg4[%c3, %c0_28, %c0_29] : memref<9x8x8xbf16, #tpu.memory_space<vmem>>, vector<1x8x8xbf16>
    %40 = vector.shape_cast %39 : vector<1x8x8xbf16> to vector<8x8xbf16>
    %cst_30 = arith.constant dense<0.000000e+00> : vector<64x8xf32>
    %41 = tpu.matmul %38, %40, %cst_30 {dimension_numbers = #tpu.dot_dimension_numbers<[1], [0], [0], [1], [0, 0, 1, 1], [], []>} : vector<64x8xbf16>, vector<8x8xbf16>, vector<64x8xf32> -> vector<64x8xf32>
    %42 = arith.addf %35, %41 : vector<64x8xf32>
    %43 = vector.extract_strided_slice %13 {offsets = [16, 0], sizes = [64, 8], strides = [1, 1]} : vector<89x8xbf16> to vector<64x8xbf16>
    %c4 = arith.constant 4 : index
    %c0_31 = arith.constant 0 : index
    %c0_32 = arith.constant 0 : index
    %44 = vector.load %arg4[%c4, %c0_31, %c0_32] : memref<9x8x8xbf16, #tpu.memory_space<vmem>>, vector<1x8x8xbf16>
    %45 = vector.shape_cast %44 : vector<1x8x8xbf16> to vector<8x8xbf16>
    %cst_33 = arith.constant dense<0.000000e+00> : vector<64x8xf32>
    %46 = tpu.matmul %43, %45, %cst_33 {dimension_numbers = #tpu.dot_dimension_numbers<[1], [0], [0], [1], [0, 0, 1, 1], [], []>} : vector<64x8xbf16>, vector<8x8xbf16>, vector<64x8xf32> -> vector<64x8xf32>
    %47 = arith.addf %42, %46 : vector<64x8xf32>
    %48 = vector.extract_strided_slice %13 {offsets = [17, 0], sizes = [64, 8], strides = [1, 1]} : vector<89x8xbf16> to vector<64x8xbf16>
    %49 = vector.broadcast %15 : vector<64x1xbf16> to vector<64x8xbf16>
    %50 = arith.mulf %48, %49 : vector<64x8xbf16>
    %c5 = arith.constant 5 : index
    %c0_34 = arith.constant 0 : index
    %c0_35 = arith.constant 0 : index
    %51 = vector.load %arg4[%c5, %c0_34, %c0_35] : memref<9x8x8xbf16, #tpu.memory_space<vmem>>, vector<1x8x8xbf16>
    %52 = vector.shape_cast %51 : vector<1x8x8xbf16> to vector<8x8xbf16>
    %cst_36 = arith.constant dense<0.000000e+00> : vector<64x8xf32>
    %53 = tpu.matmul %50, %52, %cst_36 {dimension_numbers = #tpu.dot_dimension_numbers<[1], [0], [0], [1], [0, 0, 1, 1], [], []>} : vector<64x8xbf16>, vector<8x8xbf16>, vector<64x8xf32> -> vector<64x8xf32>
    %54 = arith.addf %47, %53 : vector<64x8xf32>
    %55 = vector.extract_strided_slice %13 {offsets = [23, 0], sizes = [64, 8], strides = [1, 1]} : vector<89x8xbf16> to vector<64x8xbf16>
    %56 = vector.broadcast %14 : vector<64x1xbf16> to vector<64x8xbf16>
    %57 = arith.mulf %55, %56 : vector<64x8xbf16>
    %c6 = arith.constant 6 : index
    %c0_37 = arith.constant 0 : index
    %c0_38 = arith.constant 0 : index
    %58 = vector.load %arg4[%c6, %c0_37, %c0_38] : memref<9x8x8xbf16, #tpu.memory_space<vmem>>, vector<1x8x8xbf16>
    %59 = vector.shape_cast %58 : vector<1x8x8xbf16> to vector<8x8xbf16>
    %cst_39 = arith.constant dense<0.000000e+00> : vector<64x8xf32>
    %60 = tpu.matmul %57, %59, %cst_39 {dimension_numbers = #tpu.dot_dimension_numbers<[1], [0], [0], [1], [0, 0, 1, 1], [], []>} : vector<64x8xbf16>, vector<8x8xbf16>, vector<64x8xf32> -> vector<64x8xf32>
    %61 = arith.addf %54, %60 : vector<64x8xf32>
    %62 = vector.extract_strided_slice %13 {offsets = [24, 0], sizes = [64, 8], strides = [1, 1]} : vector<89x8xbf16> to vector<64x8xbf16>
    %c7 = arith.constant 7 : index
    %c0_40 = arith.constant 0 : index
    %c0_41 = arith.constant 0 : index
    %63 = vector.load %arg4[%c7, %c0_40, %c0_41] : memref<9x8x8xbf16, #tpu.memory_space<vmem>>, vector<1x8x8xbf16>
    %64 = vector.shape_cast %63 : vector<1x8x8xbf16> to vector<8x8xbf16>
    %cst_42 = arith.constant dense<0.000000e+00> : vector<64x8xf32>
    %65 = tpu.matmul %62, %64, %cst_42 {dimension_numbers = #tpu.dot_dimension_numbers<[1], [0], [0], [1], [0, 0, 1, 1], [], []>} : vector<64x8xbf16>, vector<8x8xbf16>, vector<64x8xf32> -> vector<64x8xf32>
    %66 = arith.addf %61, %65 : vector<64x8xf32>
    %67 = vector.extract_strided_slice %13 {offsets = [25, 0], sizes = [64, 8], strides = [1, 1]} : vector<89x8xbf16> to vector<64x8xbf16>
    %68 = vector.broadcast %15 : vector<64x1xbf16> to vector<64x8xbf16>
    %69 = arith.mulf %67, %68 : vector<64x8xbf16>
    %c8 = arith.constant 8 : index
    %c0_43 = arith.constant 0 : index
    %c0_44 = arith.constant 0 : index
    %70 = vector.load %arg4[%c8, %c0_43, %c0_44] : memref<9x8x8xbf16, #tpu.memory_space<vmem>>, vector<1x8x8xbf16>
    %71 = vector.shape_cast %70 : vector<1x8x8xbf16> to vector<8x8xbf16>
    %cst_45 = arith.constant dense<0.000000e+00> : vector<64x8xf32>
    %72 = tpu.matmul %69, %71, %cst_45 {dimension_numbers = #tpu.dot_dimension_numbers<[1], [0], [0], [1], [0, 0, 1, 1], [], []>} : vector<64x8xbf16>, vector<8x8xbf16>, vector<64x8xf32> -> vector<64x8xf32>
    %73 = arith.addf %66, %72 : vector<64x8xf32>
    %c0_46 = arith.constant 0 : index
    %c0_47 = arith.constant 0 : index
    %74 = vector.load %arg5[%c0_46, %c0_47] : memref<1x8xf32, #tpu.memory_space<vmem>>, vector<1x8xf32>
    %75 = vector.broadcast %74 : vector<1x8xf32> to vector<64x8xf32>
    %76 = arith.addf %73, %75 : vector<64x8xf32>
    %cst_48 = arith.constant 0.000000e+00 : f32
    %77 = vector.broadcast %cst_48 : f32 to vector<64x8xf32>
    %78 = arith.maximumf %76, %77 : vector<64x8xf32>
    %79 = arith.truncf %78 : vector<64x8xf32> to vector<64x8xbf16>
    %c0_49 = arith.constant 0 : index
    %c0_50 = arith.constant 0 : index
    %c0_51 = arith.constant 0 : index
    %80 = vector.load %arg8[%c0_49, %c0_50, %c0_51] : memref<1x64x8xbf16, #tpu.memory_space<vmem>>, vector<1x64x8xbf16>
    %81 = vector.shape_cast %80 : vector<1x64x8xbf16> to vector<64x8xbf16>
    %82 = vector.shape_cast %79 : vector<64x8xbf16> to vector<1x64x8xbf16>
    tpu.vector_store %arg8[%c0_49, %c0_50, %c0_51], %82 {strides = array<i32>} : memref<1x64x8xbf16, #tpu.memory_space<vmem>>, vector<1x64x8xbf16>,
    return
  }
  func.func @transform_0(%arg0: i32) -> (i32, i32, i32) {
    %c0_i32 = arith.constant 0 : i32
    %c0_i32_0 = arith.constant 0 : i32
    %c0_i32_1 = arith.constant 0 : i32
    return %arg0, %c0_i32, %c0_i32_0 : i32, i32, i32
  }
  func.func @transform_1(%arg0: i32) -> (i32, i32) {
    %c0_i32 = arith.constant 0 : i32
    %c0_i32_0 = arith.constant 0 : i32
    %c0_i32_1 = arith.constant 0 : i32
    return %c0_i32, %c0_i32_0 : i32, i32
  }
  func.func @transform_2(%arg0: i32) -> (i32, i32) {
    %c0_i32 = arith.constant 0 : i32
    %c0_i32_0 = arith.constant 0 : i32
    %c0_i32_1 = arith.constant 0 : i32
    return %c0_i32, %c0_i32_0 : i32, i32
  }
  func.func @transform_3(%arg0: i32) -> (i32, i32, i32) {
    %c0_i32 = arith.constant 0 : i32
    %c0_i32_0 = arith.constant 0 : i32
    %c0_i32_1 = arith.constant 0 : i32
    %c0_i32_2 = arith.constant 0 : i32
    return %c0_i32, %c0_i32_0, %c0_i32_1 : i32, i32, i32
  }
  func.func @transform_4(%arg0: i32) -> (i32, i32) {
    %c0_i32 = arith.constant 0 : i32
    %c0_i32_0 = arith.constant 0 : i32
    %c0_i32_1 = arith.constant 0 : i32
    return %c0_i32, %c0_i32_0 : i32, i32
  }
  func.func @transform_5(%arg0: i32) -> (i32, i32) {
    %c0_i32 = arith.constant 0 : i32
    %c0_i32_0 = arith.constant 0 : i32
    %c0_i32_1 = arith.constant 0 : i32
    return %c0_i32, %c0_i32_0 : i32, i32
  }
  func.func @transform_6(%arg0: i32) -> (i32, i32) {
    %c0_i32 = arith.constant 0 : i32
    %c0_i32_0 = arith.constant 0 : i32
    %c0_i32_1 = arith.constant 0 : i32
    return %c0_i32, %c0_i32_0 : i32, i32
  }
  func.func @transform_7(%arg0: i32) -> (i32, i32, i32) {
    %c0_i32 = arith.constant 0 : i32
    %c0_i32_0 = arith.constant 0 : i32
    %c0_i32_1 = arith.constant 0 : i32
    return %arg0, %c0_i32, %c0_i32_0 : i32, i32, i32
  }
}

module attributes {stable_mosaic.version = 11 : i64} {
  func.func @_final_downsample_kernel(%arg0: i32, %arg1: i32, %arg2: memref<128x8xbf16, #tpu.memory_space<vmem>>, %arg3: memref<8x32xbf16, #tpu.memory_space<vmem>>, %arg4: memref<1x32xf32, #tpu.memory_space<vmem>>, %arg5: memref<128x16xbf16, #tpu.memory_space<vmem>>, %arg6: memref<16x32xbf16, #tpu.memory_space<vmem>>, %arg7: memref<1x32xf32, #tpu.memory_space<vmem>>, %arg8: memref<128x32xf32, #tpu.memory_space<vmem>>) attributes {dimension_semantics = [#tpu.dimension_semantics<parallel>, #tpu.dimension_semantics<parallel>], iteration_bounds = array<i64: 1, 1>, scalar_prefetch = 0 : i64, scratch_operands = 0 : i64, tpu.core_type = #tpu.core_type<tc>, window_params = [{transform_indices = @transform_0, window_bounds = array<i64: 128, 8>}, {transform_indices = @transform_1, window_bounds = array<i64: 8, 32>}, {transform_indices = @transform_2, window_bounds = array<i64: 1, 32>}, {transform_indices = @transform_3, window_bounds = array<i64: 128, 16>}, {transform_indices = @transform_4, window_bounds = array<i64: 16, 32>}, {transform_indices = @transform_5, window_bounds = array<i64: 1, 32>}, {transform_indices = @transform_6, window_bounds = array<i64: 128, 32>}]} {
    %c0 = arith.constant 0 : index
    %c0_0 = arith.constant 0 : index
    %0 = vector.load %arg2[%c0, %c0_0] : memref<128x8xbf16, #tpu.memory_space<vmem>>, vector<128x8xbf16>
    %c0_1 = arith.constant 0 : index
    %c0_2 = arith.constant 0 : index
    %1 = vector.load %arg3[%c0_1, %c0_2] : memref<8x32xbf16, #tpu.memory_space<vmem>>, vector<8x32xbf16>
    %cst = arith.constant dense<0.000000e+00> : vector<128x32xf32>
    %2 = tpu.matmul %0, %1, %cst {dimension_numbers = #tpu.dot_dimension_numbers<[1], [0], [0], [1], [0, 0, 1, 1], [], []>} : vector<128x8xbf16>, vector<8x32xbf16>, vector<128x32xf32> -> vector<128x32xf32>
    %c0_3 = arith.constant 0 : index
    %c0_4 = arith.constant 0 : index
    %3 = vector.load %arg5[%c0_3, %c0_4] : memref<128x16xbf16, #tpu.memory_space<vmem>>, vector<128x16xbf16>
    %c0_5 = arith.constant 0 : index
    %c0_6 = arith.constant 0 : index
    %4 = vector.load %arg6[%c0_5, %c0_6] : memref<16x32xbf16, #tpu.memory_space<vmem>>, vector<16x32xbf16>
    %cst_7 = arith.constant dense<0.000000e+00> : vector<128x32xf32>
    %5 = tpu.matmul %3, %4, %cst_7 {dimension_numbers = #tpu.dot_dimension_numbers<[1], [0], [0], [1], [0, 0, 1, 1], [], []>} : vector<128x16xbf16>, vector<16x32xbf16>, vector<128x32xf32> -> vector<128x32xf32>
    %6 = arith.addf %2, %5 : vector<128x32xf32>
    %c0_8 = arith.constant 0 : index
    %c0_9 = arith.constant 0 : index
    %7 = vector.load %arg4[%c0_8, %c0_9] : memref<1x32xf32, #tpu.memory_space<vmem>>, vector<1x32xf32>
    %8 = vector.broadcast %7 : vector<1x32xf32> to vector<128x32xf32>
    %9 = arith.addf %6, %8 : vector<128x32xf32>
    %c0_10 = arith.constant 0 : index
    %c0_11 = arith.constant 0 : index
    %10 = vector.load %arg7[%c0_10, %c0_11] : memref<1x32xf32, #tpu.memory_space<vmem>>, vector<1x32xf32>
    %11 = vector.broadcast %10 : vector<1x32xf32> to vector<128x32xf32>
    %12 = arith.addf %9, %11 : vector<128x32xf32>
    %cst_12 = arith.constant 0.000000e+00 : f32
    %13 = vector.broadcast %cst_12 : f32 to vector<128x32xf32>
    %14 = arith.maximumf %12, %13 : vector<128x32xf32>
    %c0_13 = arith.constant 0 : index
    %c0_14 = arith.constant 0 : index
    %15 = vector.load %arg8[%c0_13, %c0_14] : memref<128x32xf32, #tpu.memory_space<vmem>>, vector<128x32xf32>
    tpu.vector_store %arg8[%c0_13, %c0_14], %14 {strides = array<i32>} : memref<128x32xf32, #tpu.memory_space<vmem>>, vector<128x32xf32>,
    return
  }
  func.func @transform_0(%arg0: i32, %arg1: i32) -> (i32, i32) {
    %c0_i32 = arith.constant 0 : i32
    %c0_i32_0 = arith.constant 0 : i32
    return %arg0, %c0_i32 : i32, i32
  }
  func.func @transform_1(%arg0: i32, %arg1: i32) -> (i32, i32) {
    %c0_i32 = arith.constant 0 : i32
    %c0_i32_0 = arith.constant 0 : i32
    return %c0_i32, %arg1 : i32, i32
  }
  func.func @transform_2(%arg0: i32, %arg1: i32) -> (i32, i32) {
    %c0_i32 = arith.constant 0 : i32
    %c0_i32_0 = arith.constant 0 : i32
    return %c0_i32, %arg1 : i32, i32
  }
  func.func @transform_3(%arg0: i32, %arg1: i32) -> (i32, i32) {
    %c0_i32 = arith.constant 0 : i32
    %c0_i32_0 = arith.constant 0 : i32
    return %arg0, %c0_i32 : i32, i32
  }
  func.func @transform_4(%arg0: i32, %arg1: i32) -> (i32, i32) {
    %c0_i32 = arith.constant 0 : i32
    %c0_i32_0 = arith.constant 0 : i32
    return %c0_i32, %arg1 : i32, i32
  }
  func.func @transform_5(%arg0: i32, %arg1: i32) -> (i32, i32) {
    %c0_i32 = arith.constant 0 : i32
    %c0_i32_0 = arith.constant 0 : i32
    return %c0_i32, %arg1 : i32, i32
  }
  func.func @transform_6(%arg0: i32, %arg1: i32) -> (i32, i32) {
    %c0_i32 = arith.constant 0 : i32
    return %arg0, %arg1 : i32, i32
  }
}

</mosaic_0001>

<bundles_post_ra>
// kernel: bottleneck_forward.3
= control target key start
LH: loop header
LB: loop body
LE: loop exit
PB: predicated region body
PF: predicated region fallthrough
CT: control target
= control target key end

     0   :  { %vm244_vm0 = vcmask 1043456   ;;  %vm219_vm1 = vcmask 64512   ;;  %vm105_vm2 = vcmask 130048   ;;  %vm353_vm3 = vcmask 261120   ;;  %s690_s1 = inlined_call_operand.vmem [shape: bf16[8,32], index: 1, kind: input, shape index: {}]   ;;  %s691_s4 = inlined_call_operand.vmem [shape: bf16[16,32], index: 4, kind: input, shape index: {}]   ;;  %s692_s0 = inlined_call_operand.vmem [shape: bf16[128,8], index: 0, kind: input, shape index: {}]   ;;  %s693_s3 = inlined_call_operand.vmem [shape: bf16[128,16], index: 3, kind: input, shape index: {}]   ;;  %s694_s2 = inlined_call_operand.vmem [shape: f32[1,32], index: 2, kind: input, shape index: {}]   ;;  %s695_s5 = inlined_call_operand.vmem [shape: f32[1,32], index: 5, kind: input, shape index: {}]   ;;  %s696_s6 = inlined_call_operand.vmem [shape: f32[128,32], index: 6, kind: output, shape index: {}]  }
   0x1   :  { %v40_v0 = vld [vmem:[%s690_s1] sm:$0xf]  ;;  %v459_v7 = vld [vmem:[%s692_s0 + $0x8] sm:$0xff]  ;;  %v460_v11 = vld [vmem:[%s692_s0 + $0x10] sm:$0xff] }
   0x2   :  { %v474_v1 = vld [vmem:[%s691_s4] sm:$0xff]  ;;  %v246_v2 = vsel %vm244_vm0, %v40_v0, 0  ;;  %v463_v8 = vld [vmem:[%s692_s0 + $0x28] sm:$0xff]  ;;  %v464_v12 = vld [vmem:[%s692_s0 + $0x30] sm:$0xff] }
   0x3   :  { %v458_v3 = vld [vmem:[%s692_s0] sm:$0xff]  ;;  %255 = vmatpush.bf16.msra.mxu1 %v246_v2  ;;  %476 = vmatpush.bf16.msra.mxu3 %v246_v2  ;;  %v467_v9 = vld [vmem:[%s693_s3 + $0x8] sm:$0xff]  ;;  %v468_v13 = vld [vmem:[%s693_s3 + $0x10] sm:$0xff] }
   0x4   :  { %v462_v4 = vld [vmem:[%s692_s0 + $0x20] sm:$0xff]  ;;  %137 = vmatpush.bf16.msra.mxu0 %v474_v1  ;;  %475 = vmatpush.bf16.msra.mxu2 %v474_v1  ;;  %v471_v10 = vld [vmem:[%s693_s3 + $0x28] sm:$0xff]  ;;  %v472_v14 = vld [vmem:[%s693_s3 + $0x30] sm:$0xff] }
   0x5   :  { %v466_v5 = vld [vmem:[%s693_s3] sm:$0xff]  ;;  %v461_v15 = vld [vmem:[%s692_s0 + $0x18] sm:$0xff] }
   0x6   :  { %v470_v6 = vld [vmem:[%s693_s3 + $0x20] sm:$0xff]  ;;  %450 = vmatmul.msk.bf16.vlgmr.msra.gmra.mxu1 %vm219_vm1, %v458_v3  ;;  %454 = vmatmul.msk.bf16.vlgmr.msra.gmra.mxu3 %vm219_vm1, %v462_v4  ;;  %v465_v16 = vld [vmem:[%s692_s0 + $0x38] sm:$0xff] }
   0x7   :  { %410 = vmatmul.msk.bf16.vlgmr.msra.gmra.mxu0 %vm105_vm2, %v466_v5  ;;  %414 = vmatmul.msk.bf16.vlgmr.msra.gmra.mxu2 %vm105_vm2, %v470_v6  ;;  %v469_v17 = vld [vmem:[%s693_s3 + $0x18] sm:$0xff]  ;;  %v587_v20 = vld [vmem:[%s694_s2] ss:$0 sm:$0xff] }
   0x8   :  { %v473_v18 = vld [vmem:[%s693_s3 + $0x38] sm:$0xff]  ;;  %v592_v23 = vld [vmem:[%s695_s5] ss:$0 sm:$0xff] }
  0x16   :  { %451 = vmatmul.msk.bf16.gmra.mxu1 %vm219_vm1, %v459_v7  ;;  %455 = vmatmul.msk.bf16.gmra.mxu3 %vm219_vm1, %v463_v8 }
  0x17   :  { %411 = vmatmul.msk.bf16.gmra.mxu0 %vm105_vm2, %v467_v9  ;;  %415 = vmatmul.msk.bf16.gmra.mxu2 %vm105_vm2, %v471_v10 }
  0x26   :  { %452 = vmatmul.msk.bf16.gmra.mxu1 %vm219_vm1, %v460_v11  ;;  %456 = vmatmul.msk.bf16.gmra.mxu3 %vm219_vm1, %v464_v12 }
  0x27   :  { %412 = vmatmul.msk.bf16.gmra.mxu0 %vm105_vm2, %v468_v13  ;;  %416 = vmatmul.msk.bf16.gmra.mxu2 %vm105_vm2, %v472_v14 }
  0x36   :  { %453 = vmatmul.msk.bf16.gmra.mxu1 %vm219_vm1, %v461_v15  ;;  %457 = vmatmul.msk.bf16.gmra.mxu3 %vm219_vm1, %v465_v16 }
  0x37   :  { %413 = vmatmul.msk.bf16.gmra.mxu0 %vm105_vm2, %v469_v17  ;;  %417 = vmatmul.msk.bf16.gmra.mxu2 %vm105_vm2, %v473_v18 }
  0x83   :  { %v257_v19 = vpop.f32.mrf.mxu1 }
  0x84   :  { %v139_v21 = vpop.f32.mrf.mxu0 }
  0x85   :  { %v258_v22 = vadd.f32 %v257_v19, %v139_v21 }
  0x87   :  { %v301_v24 = vadd.f32 %v587_v20, %v258_v22 }
  0x89   :  { %v321_v25 = vadd.f32 %v592_v23, %v301_v24  ;;  %v277_v26 = vpop.f32.mrf.mxu3 }
  0x8a   :  { %v159_v27 = vpop.f32.mrf.mxu2 }
  0x8b   :  { %v337_v28 = vmax.f32 %v321_v25, 0.0  ;;  %v278_v29 = vadd.f32 %v277_v26, %v159_v27  ;;  %v259_v30 = vpop.f32.mrf.mxu1 }
  0x8c   :  { %v141_v31 = vpop.f32.mrf.mxu0 }
  0x8d   :  { %354 = vst.msk [vmem:[%s696_s6] sm:$0xff] %vm353_vm3, %v337_v28  ;;  %v309_v32 = vadd.f32 %v587_v20, %v278_v29  ;;  %v260_v33 = vadd.f32 %v259_v30, %v141_v31 }
  0x8f   :  { %v329_v34 = vadd.f32 %v592_v23, %v309_v32  ;;  %v302_v35 = vadd.f32 %v587_v20, %v260_v33 }
  0x91   :  { %v345_v36 = vmax.f32 %v329_v34, 0.0  ;;  %v322_v37 = vadd.f32 %v592_v23, %v302_v35  ;;  %v279_v38 = vpop.f32.mrf.mxu3 }
  0x92   :  { %v161_v39 = vpop.f32.mrf.mxu2 }
  0x93   :  { %362 = vst.msk [vmem:[%s696_s6 + $0x40] sm:$0xff] %vm353_vm3, %v345_v36  ;;  %v338_v40 = vmax.f32 %v322_v37, 0.0  ;;  %v280_v41 = vadd.f32 %v279_v38, %v161_v39  ;;  %v262_v42 = vpop.f32.mrf.mxu1 }
  0x94   :  { %v144_v43 = vpop.f32.mrf.mxu0 }
  0x95   :  { %355 = vst.msk [vmem:[%s696_s6 + $0x8] sm:$0xff] %vm353_vm3, %v338_v40  ;;  %v310_v44 = vadd.f32 %v587_v20, %v280_v41  ;;  %v263_v45 = vadd.f32 %v262_v42, %v144_v43 }
  0x97   :  { %v330_v46 = vadd.f32 %v592_v23, %v310_v44  ;;  %v303_v47 = vadd.f32 %v587_v20, %v263_v45 }
  0x99   :  { %v346_v48 = vmax.f32 %v330_v46, 0.0  ;;  %v323_v49 = vadd.f32 %v592_v23, %v303_v47  ;;  %v282_v50 = vpop.f32.mrf.mxu3 }
  0x9a   :  { %v164_v51 = vpop.f32.mrf.mxu2 }
  0x9b   :  { %363 = vst.msk [vmem:[%s696_s6 + $0x48] sm:$0xff] %vm353_vm3, %v346_v48  ;;  %v339_v52 = vmax.f32 %v323_v49, 0.0  ;;  %v283_v53 = vadd.f32 %v282_v50, %v164_v51  ;;  %v264_v54 = vpop.f32.mrf.mxu1 }
  0x9c   :  { %v146_v55 = vpop.f32.mrf.mxu0 }
  0x9d   :  { %356 = vst.msk [vmem:[%s696_s6 + $0x10] sm:$0xff] %vm353_vm3, %v339_v52  ;;  %v311_v56 = vadd.f32 %v587_v20, %v283_v53  ;;  %v265_v57 = vadd.f32 %v264_v54, %v146_v55 }
  0x9f   :  { %v331_v58 = vadd.f32 %v592_v23, %v311_v56  ;;  %v304_v59 = vadd.f32 %v587_v20, %v265_v57 }
  0xa1   :  { %v347_v60 = vmax.f32 %v331_v58, 0.0  ;;  %v324_v61 = vadd.f32 %v592_v23, %v304_v59  ;;  %v284_v62 = vpop.f32.mrf.mxu3 }
  0xa2   :  { %v166_v63 = vpop.f32.mrf.mxu2 }
  0xa3   :  { %364 = vst.msk [vmem:[%s696_s6 + $0x50] sm:$0xff] %vm353_vm3, %v347_v60  ;;  %v340_v0 = vmax.f32 %v324_v61, 0.0  ;;  %v285_v1 = vadd.f32 %v284_v62, %v166_v63  ;;  %v267_v2 = vpop.f32.mrf.mxu1 }
  0xa4   :  { %v149_v3 = vpop.f32.mrf.mxu0 }
  0xa5   :  { %357 = vst.msk [vmem:[%s696_s6 + $0x18] sm:$0xff] %vm353_vm3, %v340_v0  ;;  %v312_v4 = vadd.f32 %v587_v20, %v285_v1  ;;  %v268_v5 = vadd.f32 %v267_v2, %v149_v3 }
  0xa7   :  { %v332_v6 = vadd.f32 %v592_v23, %v312_v4  ;;  %v305_v7 = vadd.f32 %v587_v20, %v268_v5 }
  0xa9   :  { %v348_v8 = vmax.f32 %v332_v6, 0.0  ;;  %v325_v9 = vadd.f32 %v592_v23, %v305_v7  ;;  %v287_v10 = vpop.f32.mrf.mxu3 }
  0xaa   :  { %v169_v11 = vpop.f32.mrf.mxu2 }
  0xab   :  { %365 = vst.msk [vmem:[%s696_s6 + $0x58] sm:$0xff] %vm353_vm3, %v348_v8  ;;  %v341_v12 = vmax.f32 %v325_v9, 0.0  ;;  %v288_v13 = vadd.f32 %v287_v10, %v169_v11  ;;  %v269_v14 = vpop.f32.mrf.mxu1 }
  0xac   :  { %v151_v15 = vpop.f32.mrf.mxu0 }
  0xad   :  { %358 = vst.msk [vmem:[%s696_s6 + $0x20] sm:$0xff] %vm353_vm3, %v341_v12  ;;  %v313_v16 = vadd.f32 %v587_v20, %v288_v13  ;;  %v270_v17 = vadd.f32 %v269_v14, %v151_v15 }
  0xaf   :  { %v333_v18 = vadd.f32 %v592_v23, %v313_v16  ;;  %v306_v19 = vadd.f32 %v587_v20, %v270_v17 }
  0xb1   :  { %v349_v21 = vmax.f32 %v333_v18, 0.0  ;;  %v326_v22 = vadd.f32 %v592_v23, %v306_v19  ;;  %v289_v24 = vpop.f32.mrf.mxu3 }
  0xb2   :  { %v171_v25 = vpop.f32.mrf.mxu2 }
  0xb3   :  { %366 = vst.msk [vmem:[%s696_s6 + $0x60] sm:$0xff] %vm353_vm3, %v349_v21  ;;  %v342_v26 = vmax.f32 %v326_v22, 0.0  ;;  %v290_v27 = vadd.f32 %v289_v24, %v171_v25  ;;  %v272_v28 = vpop.f32.mrf.mxu1 }
  0xb4   :  { %v154_v29 = vpop.f32.mrf.mxu0 }
  0xb5   :  { %359 = vst.msk [vmem:[%s696_s6 + $0x28] sm:$0xff] %vm353_vm3, %v342_v26  ;;  %v314_v30 = vadd.f32 %v587_v20, %v290_v27  ;;  %v273_v31 = vadd.f32 %v272_v28, %v154_v29 }
  0xb7   :  { %v334_v32 = vadd.f32 %v592_v23, %v314_v30  ;;  %v307_v33 = vadd.f32 %v587_v20, %v273_v31 }
  0xb9   :  { %v350_v34 = vmax.f32 %v334_v32, 0.0  ;;  %v327_v35 = vadd.f32 %v592_v23, %v307_v33  ;;  %v292_v36 = vpop.f32.mrf.mxu3 }
  0xba   :  { %v174_v37 = vpop.f32.mrf.mxu2 }
  0xbb   :  { %367 = vst.msk [vmem:[%s696_s6 + $0x68] sm:$0xff] %vm353_vm3, %v350_v34  ;;  %v343_v38 = vmax.f32 %v327_v35, 0.0  ;;  %v293_v39 = vadd.f32 %v292_v36, %v174_v37  ;;  %v274_v40 = vpop.f32.mrf.mxu1 }
  0xbc   :  { %v156_v41 = vpop.f32.mrf.mxu0 }
  0xbd   :  { %360 = vst.msk [vmem:[%s696_s6 + $0x30] sm:$0xff] %vm353_vm3, %v343_v38  ;;  %v315_v42 = vadd.f32 %v587_v20, %v293_v39  ;;  %v275_v43 = vadd.f32 %v274_v40, %v156_v41 }
  0xbf   :  { %v335_v44 = vadd.f32 %v592_v23, %v315_v42  ;;  %v308_v45 = vadd.f32 %v587_v20, %v275_v43 }
  0xc1   :  { %v351_v46 = vmax.f32 %v335_v44, 0.0  ;;  %v328_v47 = vadd.f32 %v592_v23, %v308_v45  ;;  %v294_v48 = vpop.f32.mrf.mxu3 }
  0xc2   :  { %v176_v49 = vpop.f32.mrf.mxu2 }
  0xc3   :  { %368 = vst.msk [vmem:[%s696_s6 + $0x70] sm:$0xff] %vm353_vm3, %v351_v46  ;;  %v344_v50 = vmax.f32 %v328_v47, 0.0  ;;  %v295_v51 = vadd.f32 %v294_v48, %v176_v49 }
  0xc5   :  { %361 = vst.msk [vmem:[%s696_s6 + $0x38] sm:$0xff] %vm353_vm3, %v344_v50  ;;  %v316_v52 = vadd.f32 %v587_v20, %v295_v51 }
  0xc7   :  { %v336_v53 = vadd.f32 %v592_v23, %v316_v52 }
  0xc9   :  { %v352_v54 = vmax.f32 %v336_v53, 0.0 }
  0xcb   :  { %369 = vst.msk [vmem:[%s696_s6 + $0x78] sm:$0xff] %vm353_vm3, %v352_v54 }

// kernel: bottleneck_forward.2
= control target key start
LH: loop header
LB: loop body
LE: loop exit
PB: predicated region body
PF: predicated region fallthrough
CT: control target
= control target key end

     0   :  { %s1731_s24 = smov 0   ;;  %s2457_s0 = inlined_call_operand.vmem [shape: bf16[2,64,16], index: 0, kind: input, shape index: {}]   ;;  %s2458_s1 = inlined_call_operand.vmem [shape: bf16[16,8], index: 1, kind: input, shape index: {}]   ;;  %s2459_s2 = inlined_call_operand.vmem [shape: f32[1,8], index: 2, kind: input, shape index: {}]   ;;  %s2460_s3 = inlined_call_operand.vmem [shape: bf16[9,8,8], index: 3, kind: input, shape index: {}]   ;;  %s2461_s4 = inlined_call_operand.vmem [shape: f32[1,8], index: 4, kind: input, shape index: {}]   ;;  %s2462_s5 = inlined_call_operand.vmem [shape: bf16[64,1], index: 5, kind: input, shape index: {}]   ;;  %s2463_s6 = inlined_call_operand.vmem [shape: bf16[64,1], index: 6, kind: input, shape index: {}]   ;;  %s2464_s7 = inlined_call_operand.vmem [shape: bf16[2,64,8], index: 7, kind: output, shape index: {}]  }
   0x1 LB: > { %s1578_s25 = sadd.s32 4294967295, %s1687_s24   ;;  %p1582_p0 = scmp.ge.s32.totalorder %s1687_s24, 1  ;;  %s1687_s24 = sphi %s1731_s24, %s17_s24  }
   0x2   : > { %p237_p1 = scmp.lt.s32.totalorder %s1687_s24, 3 }
   0x4   : > { %p238_p2 = pnand %p1582_p0, %p237_p1 }
   0x5   : > { %p269_p3 = scmp.lt.s32.totalorder (!%p238_p2), %s1578_s25, 1 }
   0x6   : > { %241 = sbr.rel (%p238_p2) target bundleno = 481 (0x1e1), region = 48 }
   0xb   : > { %v1663_v0 = vld [vmem:[%s2458_s1] sm:$0xff]  ;;  %v1689_v2 = vmov 0   ;;  %v418_v3 = vld [vmem:[%s2462_s5 + $0x8] sm:$0xf]  ;;  %s2474_s25 = smov (!%p269_p3, %s1578_s25), 1  ;;  %vm320_vm0 = vcmask 130048  }
   0xc   : > { %v416_v1 = vld [vmem:[%s2462_s5] sm:$0xf]  ;;  %1676 = vset.pattern.permute.xlu0 %v1689_v2  ;;  %1677 = vset.pattern.permute.xlu1 %v1689_v2  ;;  %s1657_s11 = sshll.u32 %s2474_s25, 5  ;;  %v417_v7 = vld [vmem:[%s2462_s5 + $0x4] sm:$0xf]  ;;  %vm378_vm1 = vcmask 60416  }
   0xd   : > { %340 = vmatpush.bf16.msra.mxu0 %v1663_v0  ;;  %1664 = vmatpush.bf16.msra.mxu2 %v1663_v0  ;;  %v424_v4 = vld [vmem:[%s2463_s6] sm:$0xf]  ;;  %s273_s14 = scalar_lea.vmem %s2457_s0, %s1657_s11  ;;  %v419_v8 = vld [vmem:[%s2462_s5 + $0xc] sm:$0xf]  ;;  %v425_v9 = vld [vmem:[%s2463_s6 + $0x4] sm:$0xf]  ;;  %s2407_s27 = scalar_lea.vmem %s2464_s7, %s1657_s11 }
   0xe   : > { %434 = vperm.xlu0 %1676, %v416_v1   ;;  %452 = vperm.xlu1 %1677, %v418_v3   ;;  %v1659_v5 = vld [vmem:[%s273_s14] sm:$0xff]  ;;  %v1661_v6 = vld [vmem:[%s273_s14 + $0x10] sm:$0xff]  ;;  %v426_v10 = vld [vmem:[%s2463_s6 + $0x8] sm:$0xf]  ;;  %379 = vst.msk [vmem:[#allocation2] sm:$0xf] %vm378_vm1, %v1689_v2 }
   0xf   : > { %1678 = vset.pattern.permute.xlu2 %v1689_v2  ;;  %v427_v11 = vld [vmem:[%s2463_s6 + $0xc] sm:$0xf]  ;;  %v420_v12 = vld [vmem:[%s2462_s5 + $0x10] sm:$0xf]  ;;  %v1662_v14 = vld [vmem:[%s273_s14 + $0x18] sm:$0xff]  ;;  %vm604_vm2 = vcmask 1043456  }
  0x10   : > { %728 = vperm.xlu2 %1678, %v424_v4   ;;  %1607 = vmatmul.msk.bf16.vlgmr.msra.gmra.mxu0 %vm320_vm0, %v1659_v5  ;;  %v1660_v13 = vld [vmem:[%s273_s14 + $0x8] sm:$0xff]  ;;  %v421_v15 = vld [vmem:[%s2462_s5 + $0x14] sm:$0xf]  ;;  %v428_v16 = vld [vmem:[%s2463_s6 + $0x10] sm:$0xf]  ;;  %vm529_vm3 = vcmask 1046528  }
  0x11   : > { %1609 = vmatmul.msk.bf16.vlgmr.msra.gmra.mxu2 %vm320_vm0, %v1661_v6  ;;  %v429_v17 = vld [vmem:[%s2463_s6 + $0x14] sm:$0xf]  ;;  %v422_v18 = vld [vmem:[%s2462_s5 + $0x18] sm:$0xf]  ;;  %v423_v19 = vld [vmem:[%s2462_s5 + $0x1c] sm:$0xf] }
  0x12   : > { %v430_v20 = vld [vmem:[%s2463_s6 + $0x18] sm:$0xf]  ;;  %v431_v21 = vld [vmem:[%s2463_s6 + $0x1c] sm:$0xf]  ;;  %380 = vst.msk [vmem:[#allocation2 + $0x4] sm:$0xf] %vm378_vm1, %v1689_v2 }
  0x13   : > { %381 = vst.msk [vmem:[#allocation2 + $0x8] sm:$0xf] %vm378_vm1, %v1689_v2  ;;  %v1611_v22 = vld [vmem:[%s2460_s3 + $0x4] sm:$0xf]  ;;  %v1690_v27 = vmov 839922192  }
  0x14   : > { %382 = vst.msk [vmem:[#allocation2 + $0xc] sm:$0xf] %vm378_vm1, %v1689_v2  ;;  %v606_v23 = vsel %vm604_vm2, %v1611_v22, 0  ;;  %v438_v28 = vunpack.c.l.s4 %v1690_v27  ;;  %v1822_v31 = vld [vmem:[%s2459_s2] ss:$0 sm:$0xff]  ;;  %vm591_vm4 = vcmask 64512  }
  0x15   : > { %383 = vst.msk [vmem:[#allocation2 + $0x10] sm:$0xf] %vm378_vm1, %v1689_v2  ;;  %615 = vmatpush.bf16.msra.mxu1 %v606_v23  ;;  %1665 = vmatpush.bf16.msra.mxu3 %v606_v23  ;;  %v568_v33 = vld [vmem:[%s2460_s3] sm:$0xf]  ;;  %v1625_v52 = vld [vmem:[%s2460_s3 + $0xc] sm:$0xf] }
  0x16   : > { %443 = vperm.xlu0 %1676, %v417_v7   ;;  %461 = vperm.xlu1 %1677, %v419_v8   ;;  %384 = vst.msk [vmem:[#allocation2 + $0x14] sm:$0xf] %vm378_vm1, %v1689_v2  ;;  %v1817_v30 = vunpack.c.0.s8 %v438_v28  ;;  %v695_v36 = vsel %vm604_vm2, %v568_v33, 0  ;;  %v404_v46 = vld [vmem:[#allocation2] sm:$0xf]  ;;  %v1018_v57 = vsel %vm604_vm2, %v1625_v52, 0 }
  0x17   : > { %385 = vst.msk [vmem:[#allocation2 + $0x18] sm:$0xf] %vm378_vm1, %v1689_v2  ;;  %704 = vmatpush.bf16.msrb.mxu2 %v695_v36  ;;  %v504_v58 = vunpack.c.l.bf16 %v404_v46  ;;  %1027 = vmatpush.bf16.msrb.mxu0 %v1018_v57  ;;  %vm815_vm5 = vcmask 1040384   ;;  %vm637_vm6 = vsmask.f32 4352  ;;  %vm390_vm8 = vcmask 57344  }
  0x18   : > { %737 = vperm.xlu2 %1678, %v425_v9   ;;  %386 = vst.msk [vmem:[#allocation2 + $0x1c] sm:$0xf] %vm378_vm1, %v1689_v2  ;;  %vm856_vm7 = vsmask.f32 7424  ;;  %vm391_vm9 = vsmask.f32 256 }
  0x19   : > { %387 = vst.msk [vmem:[#allocation2 + $0x20] sm:$0xf] %vm378_vm1, %v1689_v2  ;;  %v405_v56 = vld [vmem:[#allocation2 + $0x4] sm:$0xf]  ;;  %vm392_vm10 = vmand %vm390_vm8, %vm391_vm9 }
  0x1a   : > { %388 = vst.msk [vmem:[#allocation2 + $0x24] sm:$0xf] %vm378_vm1, %v1689_v2  ;;  %v505_v1 = vunpack.c.l.bf16 %v405_v56  ;;  %v579_v5 = vunpack.c.l.b16 %v405_v56 }
  0x1b   : > { %389 = vst.msk [vmem:[#allocation2 + $0x28] sm:$0xf] %vm378_vm1, %v1689_v2 }
  0x1e   : > { %746 = vperm.xlu0 %1676, %v426_v10   ;;  %755 = vperm.xlu1 %1677, %v427_v11  }
  0x20   : > { %470 = vperm.xlu2 %1678, %v420_v12   ;;  %1608 = vmatmul.msk.bf16.gmra.mxu0 %vm320_vm0, %v1660_v13 }
  0x21   : > { %1610 = vmatmul.msk.bf16.gmra.mxu2 %vm320_vm0, %v1662_v14 }
  0x26   : > { %479 = vperm.xlu0 %1676, %v421_v15   ;;  %764 = vperm.xlu1 %1677, %v428_v16  }
  0x28   : > { %773 = vperm.xlu2 %1678, %v429_v17   ;;  %v1630_v17 = vld [vmem:[%s2460_s3 + $0x10] sm:$0xf] }
  0x2e   : > { %488 = vperm.xlu0 %1676, %v422_v18   ;;  %497 = vperm.xlu1 %1677, %v423_v19  }
  0x30   : > { %782 = vperm.xlu2 %1678, %v430_v20   ;;  %v1078_v20 = vsel %vm604_vm2, %v1630_v17, 0 }
  0x31   : > { %1087 = vmatpush.bf16.msrb.mxu1 %v1078_v20 }
  0x36   : > { %791 = vperm.xlu0 %1676, %v431_v21  }
  0x6a   : > { %v729_v26 = vpop.permute.xlu2 %728 }
  0x6b   : > { %v734_v59 = vperm.slane %v729_v26, %v1817_v30  ;;  %v1620_v26 = vld [vmem:[%s2460_s3 + $0x8] sm:$0xf] }
  0x6d   : > { %v799_v7 = vunpack.c.l.bf16 %v734_v59 }
  0x6f   : > { %v1883_v27 = vrot.slane %v799_v7, 7 }
  0x72   : > { %v738_v39 = vpop.permute.xlu2 %737 }
  0x73   : > { %v743_v62 = vperm.slane %v738_v39, %v1817_v30 }
  0x75   : > { %v1862_v12 = vunpack.c.l.bf16 %v743_v62 }
  0x77   : > { %v817_v33 = vrot.slane %v1862_v12, 7 }
  0x7a   : > { %v471_v0 = vpop.permute.xlu2 %470 }
  0x7b   : > { %v476_v14 = vperm.slane %v471_v0, %v1817_v30 }
  0x80   : > { %v435_v24 = vpop.permute.xlu0 %434  ;;  %v453_v25 = vpop.permute.xlu1 %452 }
  0x81   : > { %v440_v34 = vperm.slane %v435_v24, %v1817_v30  ;;  %v458_v50 = vperm.slane %v453_v25, %v1817_v30 }
  0x83   : > { %v513_v41 = vunpack.c.l.bf16 %v440_v34  ;;  %v515_v3 = vunpack.c.l.bf16 %v458_v50  ;;  %v1909_v50 = vsel %vm815_vm5, %v1883_v27, %v817_v33 }
  0x85   : > { %v1839_v49 = vrot.slane %v513_v41, 1  ;;  %v533_v21 = vrot.slane %v515_v3, 1 }
  0x87   : > { %v554_v6 = vmul.f32 %v1839_v49, %v504_v58 }
  0x88   : > { %v444_v29 = vpop.permute.xlu0 %443  ;;  %v462_v32 = vpop.permute.xlu1 %461 }
  0x89   : > { %v449_v37 = vperm.slane %v444_v29, %v1817_v30  ;;  %v467_v60 = vperm.slane %v462_v32, %v1817_v30  ;;  %v906_v32 = vsel %vm604_vm2, %v1620_v26, 0 }
  0x8a   : > { %915 = vmatpush.bf16.msrb.mxu3 %v906_v32 }
  0x8b   : > { %v1831_v42 = vunpack.c.l.bf16 %v449_v37  ;;  %v1857_v8 = vunpack.c.l.bf16 %v467_v60 }
  0x8d   : > { %v342_v35 = vpop.f32.mrf.mxu0  ;;  %v531_v53 = vrot.slane %v1831_v42, 1  ;;  %v535_v28 = vrot.slane %v1857_v8, 1 }
  0x8e   : > { %v343_v38 = vadd.f32 %v1822_v31, %v342_v35  ;;  %v1888_v35 = vunpack.c.l.bf16 %v476_v14 }
  0x8f   : > { %v1853_v2 = vsel %vm529_vm3, %v1839_v49, %v531_v53  ;;  %v1900_v41 = vsel %vm529_vm3, %v533_v21, %v535_v28 }
  0x90   : > { %v362_v40 = vmax.f32 %v343_v38, 0.0  ;;  %v1833_v44 = vpop.permute.xlu0 %746  ;;  %v1837_v48 = vpop.permute.xlu1 %755  ;;  %v555_v11 = vmul.f32 %v1853_v2, %v505_v1  ;;  %v1896_v38 = vsel %vm529_vm3, %v531_v53, %v533_v21 }
  0x92   : > { %v370_v43 = vpack.c.bf16 %v362_v40, %v362_v40  ;;  %v563_v29 = vpack.c.bf16 %v555_v11, %v554_v6  ;;  %v774_v40 = vpop.permute.xlu2 %773  ;;  %v761_v11 = vperm.slane %v1837_v48, %v1817_v30 }
  0x93   : > { %v779_v56 = vperm.slane %v774_v40, %v1817_v30 }
  0x94   : > { %v352_v45 = vpop.f32.mrf.mxu2  ;;  %396 = vst.msk [vmem:[#allocation2 + $0x8] sm:$0xf] %vm378_vm1, %v370_v43  ;;  %v639_v46 = vshrl.u32 %v563_v29, 16 }
  0x95   : > { %v353_v47 = vadd.f32 %v1822_v31, %v352_v45  ;;  %v344_v51 = vpop.f32.mrf.mxu0 }
  0x96   : > { %v345_v55 = vadd.f32 %v1822_v31, %v344_v51  ;;  %v537_v51 = vrot.slane %v1888_v35, 1 }
  0x97   : > { %v366_v54 = vmax.f32 %v353_v47, 0.0  ;;  %v642_v47 = vshll.u32 %v563_v29, 16 }
  0x98   : > { %v363_v63 = vmax.f32 %v345_v55, 0.0  ;;  %v480_v15 = vpop.permute.xlu0 %479  ;;  %v1878_v25 = vpop.permute.xlu1 %764  ;;  %v945_v55 = vmul.f32 %v1839_v49, %v505_v1 }
  0x99   : > { %v374_v61 = vpack.c.bf16 %v366_v54, %v366_v54  ;;  %v485_v42 = vperm.slane %v480_v15, %v1817_v30  ;;  %v1918_v54 = vmul.f32 %v1883_v27, %v505_v1  ;;  %v641_v1 = vrot.slane %v639_v46, 3 }
  0x9a   : > { %v371_v4 = vpack.c.bf16 %v363_v63, %v363_v63  ;;  %v644_v3 = vrot.slane %v642_v47, 4  ;;  %v783_v26 = vpop.permute.xlu2 %782  ;;  %v1967_v47 = vunpack.c.l.bf16 %v761_v11 }
  0x9b   : > { %400 = vst.msk [vmem:[#allocation2 + $0x18] sm:$0xf] %vm378_vm1, %v374_v61  ;;  %v1859_v10 = vld [vmem:[#allocation2 + $0x8] sm:$0xf]  ;;  %v1929_v0 = vunpack.c.l.bf16 %v485_v42 }
  0x9c   : > { %v354_v9 = vpop.f32.mrf.mxu2  ;;  %397 = vst.msk [vmem:[#allocation2 + $0xc] sm:$0xf] %vm378_vm1, %v371_v4  ;;  %v580_v16 = vunpack.c.l.b16 %v1859_v10  ;;  %v1872_v19 = vunpack.c.l.bf16 %v1859_v10  ;;  %v1933_v4 = vsel %vm529_vm3, %v535_v28, %v537_v51 }
  0x9d   : > { %v355_v13 = vadd.f32 %v1822_v31, %v354_v9  ;;  %v347_v18 = vpop.f32.mrf.mxu0  ;;  %v752_v9 = vperm.slane %v1833_v44, %v1817_v30  ;;  %v539_v20 = vrot.slane %v1929_v0, 1 }
  0x9e   : > { %v348_v23 = vadd.f32 %v1822_v31, %v347_v18  ;;  %v587_v24 = vpack.c.b16 %v580_v16, %v579_v5  ;;  %v1893_v37 = vmul.f32 %v1839_v49, %v1872_v19  ;;  %v946_v58 = vmul.f32 %v1853_v2, %v1872_v19 }
  0x9f   : > { %v367_v22 = vmax.f32 %v355_v13, 0.0  ;;  %v556_v62 = vmul.f32 %v1896_v38, %v1872_v19  ;;  %v1939_v13 = vunpack.c.l.bf16 %v779_v56 }
  0xa0   : > { %v364_v36 = vmax.f32 %v348_v23, 0.0  ;;  %1612 = vmatmul.msk.bf16.vlgmr.msra.gmra.mxu1 %vm591_vm4, %v587_v24  ;;  %v489_v60 = vpop.permute.xlu0 %488  ;;  %v498_v7 = vpop.permute.xlu1 %497  ;;  %v954_v14 = vpack.c.bf16 %v946_v58, %v945_v55  ;;  %v645_v24 = vor.u32 %v644_v3, %v641_v1 }
  0xa1   : > { %v375_v34 = vpack.c.bf16 %v367_v22, %v367_v22  ;;  %v494_v49 = vperm.slane %v489_v60, %v1817_v30  ;;  %v503_v23 = vperm.slane %v498_v7, %v1817_v30 }
  0xa2   : > { %v372_v39 = vpack.c.bf16 %v364_v36, %v364_v36  ;;  %v962_v36 = vshrl.u32 %v954_v14, 16 }
  0xa3   : > { %401 = vst.msk [vmem:[#allocation2 + $0x1c] sm:$0xf] %vm378_vm1, %v375_v34  ;;  %v1903_v45 = vld [vmem:[#allocation2 + $0xc] sm:$0xf]  ;;  %v1943_v21 = vunpack.c.l.bf16 %v494_v49  ;;  %v520_v55 = vunpack.c.l.bf16 %v503_v23  ;;  %v801_v49 = vunpack.c.l.bf16 %v752_v9 }
  0xa4   : > { %v357_v43 = vpop.f32.mrf.mxu2  ;;  %398 = vst.msk [vmem:[#allocation2 + $0x10] sm:$0xf] %vm378_vm1, %v372_v39  ;;  %v1915_v53 = vunpack.c.l.bf16 %v1903_v45  ;;  %v581_v29 = vunpack.c.l.b16 %v1903_v45  ;;  %v965_v39 = vshll.u32 %v954_v14, 16 }
  0xa5   : > { %v358_v52 = vadd.f32 %v1822_v31, %v357_v43  ;;  %v349_v57 = vpop.f32.mrf.mxu0  ;;  %v541_v58 = vrot.slane %v1943_v21, 1  ;;  %v1990_v7 = vrot.slane %v520_v55, 1 }
  0xa6   : > { %v350_v61 = vadd.f32 %v1822_v31, %v349_v57  ;;  %v557_v63 = vmul.f32 %v1900_v41, %v1915_v53  ;;  %v947_v43 = vmul.f32 %v1896_v38, %v1915_v53  ;;  %v1973_v57 = vsel %vm529_vm3, %v537_v51, %v539_v20 }
  0xa7   : > { %v368_v59 = vmax.f32 %v358_v52, 0.0  ;;  %v788_v52 = vperm.slane %v783_v26, %v1817_v30  ;;  %v967_v0 = vrot.slane %v965_v39, 4  ;;  %v2002_v21 = vsel %vm529_vm3, %v539_v20, %v541_v58 }
  0xa8   : > { %v365_v6 = vmax.f32 %v350_v61, 0.0  ;;  %v564_v8 = vpack.c.bf16 %v557_v63, %v556_v62  ;;  %v964_v63 = vrot.slane %v962_v36, 3  ;;  %v544_v39 = vsel %vm529_vm3, %v541_v58, %v1990_v7 }
  0xa9   : > { %v376_v5 = vpack.c.bf16 %v368_v59, %v368_v59  ;;  %v2022_v36 = vunpack.c.l.bf16 %v788_v52  ;;  %v1640_v52 = vld [vmem:[%s2460_s3 + $0x18] sm:$0xf] }
  0xaa   : > { %v373_v15 = vpack.c.bf16 %v365_v6, %v365_v6  ;;  %v647_v17 = vshrl.u32 %v564_v8, 16  ;;  %v650_v18 = vshll.u32 %v564_v8, 16  ;;  %v821_v6 = vrot.slane %v1967_v47, 7 }
  0xab   : > { %402 = vst.msk [vmem:[#allocation2 + $0x20] sm:$0xf] %vm378_vm1, %v376_v5  ;;  %v1946_v44 = vld [vmem:[#allocation2 + $0x10] sm:$0xf]  ;;  %v1635_v5 = vld [vmem:[%s2460_s3 + $0x14] sm:$0xf]  ;;  %v968_v23 = vor.u32 %v967_v0, %v964_v63  ;;  %v1119_v47 = vmul.f32 %v1909_v50, %v1915_v53 }
  0xac   : > { %v359_v22 = vpop.f32.mrf.mxu2  ;;  %399 = vst.msk [vmem:[#allocation2 + $0x14] sm:$0xf] %vm378_vm1, %v373_v15  ;;  %v1951_v28 = vunpack.c.l.bf16 %v1946_v44  ;;  %v582_v32 = vunpack.c.l.b16 %v1946_v44  ;;  %v649_v34 = vrot.slane %v647_v17, 3  ;;  %v652_v35 = vrot.slane %v650_v18, 4 }
  0xad   : > { %v360_v48 = vadd.f32 %v1822_v31, %v359_v22  ;;  %v1961_v31 = vld [vmem:[#allocation2 + $0x18] sm:$0xf]  ;;  %v1183_v11 = vsel %vm604_vm2, %v1635_v5, 0  ;;  %v770_v22 = vperm.slane %v1878_v25, %v1817_v30  ;;  %v1295_v0 = vsel %vm604_vm2, %v1640_v52, 0  ;;  %v2071_v52 = vld [vmem:[#allocation2 + $0x28] sm:$0xf] }
  0xae   : > { %v1959_v42 = vpack.c.b16 %v582_v32, %v581_v29  ;;  %v948_v46 = vmul.f32 %v1900_v41, %v1951_v28  ;;  %v1970_v56 = vor.u32 %v652_v35, %v649_v34  ;;  %v1981_v62 = vunpack.c.l.bf16 %v1961_v31  ;;  %1192 = vmatpush.bf16.msra.mxu2 %v1183_v11 }
  0xaf   : > { %v369_v40 = vmax.f32 %v360_v48, 0.0  ;;  %v2465_v51 = vunpack.c.l.b16 %v1961_v31  ;;  %v2008_v48 = vld [vmem:[#allocation2 + $0x1c] sm:$0xf]  ;;  %v819_v35 = vrot.slane %v801_v49, 7 }
  0xb0   : > { %1613 = vmatmul.msk.bf16.gmra.mxu1 %vm591_vm4, %v1959_v42  ;;  %v955_v60 = vpack.c.bf16 %v948_v46, %v947_v43  ;;  %v654_v61 = vsel %vm637_vm6, %v645_v24, %v1970_v56  ;;  %v950_v9 = vmul.f32 %v1973_v57, %v1981_v62  ;;  %v558_v24 = vmul.f32 %v1933_v4, %v1951_v28 }
  0xb1   : > { %v377_v59 = vpack.c.bf16 %v369_v40, %v369_v40  ;;  %1616 = vmatmul.msk.bf16.vlgmr.msrb.gmra.mxu2 %vm591_vm4, %v654_v61  ;;  %v841_v40 = vmul.f32 %v1909_v50, %v1872_v19  ;;  %v2033_v55 = vunpack.c.l.bf16 %v2008_v48  ;;  %v2041_v58 = vsel %vm815_vm5, %v819_v35, %v821_v6 }
  0xb2   : > { %v970_v1 = vshrl.u32 %v955_v60, 16  ;;  %v973_v3 = vshll.u32 %v955_v60, 16  ;;  %v2043_v60 = vunpack.c.l.bf16 %v770_v22  ;;  %v560_v63 = vmul.f32 %v2002_v21, %v1981_v62 }
  0xb3   : > { %403 = vst.msk [vmem:[#allocation2 + $0x24] sm:$0xf] %vm378_vm1, %v377_v59  ;;  %v1992_v8 = vld [vmem:[#allocation2 + $0x14] sm:$0xf]  ;;  %v561_v11 = vmul.f32 %v544_v39, %v2033_v55  ;;  %v827_v22 = vrot.slane %v2022_v36, 7 }
  0xb4   : > { %v1998_v14 = vunpack.c.l.bf16 %v1992_v8  ;;  %v2466_v15 = vunpack.c.l.b16 %v1992_v8  ;;  %v972_v17 = vrot.slane %v970_v1, 3  ;;  %v975_v18 = vrot.slane %v973_v3, 4  ;;  %v792_v1 = vpop.permute.xlu0 %791 }
  0xb6   : > { %v2014_v26 = vpack.c.b16 %v2465_v51, %v2466_v15  ;;  %v2016_v34 = vor.u32 %v975_v18, %v972_v17  ;;  %v559_v20 = vmul.f32 %v1973_v57, %v1998_v14  ;;  %v949_v25 = vmul.f32 %v1933_v4, %v1998_v14 }
  0xb7   : > { %v2060_v17 = vsel %vm815_vm5, %v817_v33, %v819_v35  ;;  %v825_v18 = vrot.slane %v1939_v13, 7  ;;  %v843_v35 = vmul.f32 %v2041_v58, %v1951_v28 }
  0xb8   : > { %1614 = vmatmul.msk.bf16.vlgmr.msra.gmra.mxu3 %vm591_vm4, %v2014_v26  ;;  %v977_v43 = vsel %vm637_vm6, %v968_v23, %v2016_v34  ;;  %v565_v46 = vpack.c.bf16 %v559_v20, %v558_v24  ;;  %v956_v59 = vpack.c.bf16 %v950_v9, %v949_v25  ;;  %v2054_v9 = vld [vmem:[#allocation2 + $0x20] sm:$0xf]  ;;  %v2065_v23 = vpack.c.bf16 %v841_v40, %v1918_v54 }
  0xb9   : > { %1626 = vmatmul.msk.bf16.vlgmr.msrb.gmra.mxu0 %vm591_vm4, %v977_v43  ;;  %1304 = vmatpush.bf16.msra.mxu3 %v1295_v0  ;;  %v2074_v33 = vunpack.c.l.bf16 %v2054_v9  ;;  %v823_v54 = vrot.slane %v2043_v60, 7  ;;  %v1061_v40 = vpack.c.b16 %v581_v29, %v580_v16  ;;  %v566_v0 = vpack.c.bf16 %v561_v11, %v560_v63  ;;  %v1645_v60 = vld [vmem:[%s2460_s3 + $0x1c] sm:$0xf] }
  0xba   : > { %v2045_v61 = vld [vmem:[#allocation2 + $0x24] sm:$0xf]  ;;  %v656_v3 = vshrl.u32 %v565_v46, 16  ;;  %v659_v5 = vshll.u32 %v565_v46, 16  ;;  %v979_v25 = vshrl.u32 %v956_v59, 16  ;;  %v982_v43 = vshll.u32 %v956_v59, 16 }
  0xbb   : > { %v2052_v49 = vunpack.c.l.bf16 %v2045_v61  ;;  %v797_v46 = vperm.slane %v792_v1, %v1817_v30  ;;  %v842_v30 = vmul.f32 %v2060_v17, %v1915_v53  ;;  %v951_v1 = vmul.f32 %v2002_v21, %v2033_v55 }
  0xbc   : > { %v658_v20 = vrot.slane %v656_v3, 3  ;;  %v661_v12 = vrot.slane %v659_v5, 4  ;;  %v952_v3 = vmul.f32 %v544_v39, %v2074_v33  ;;  %v2095_v10 = vsel %vm815_vm5, %v825_v18, %v827_v22 }
  0xbd   : > { %v2068_v24 = vmul.f32 %v2052_v49, %v544_v39  ;;  %v2098_v16 = vunpack.c.l.bf16 %v2071_v52  ;;  %v981_v45 = vrot.slane %v979_v25, 3  ;;  %v984_v29 = vrot.slane %v982_v43, 4 }
  0xbe   : > { %v2083_v59 = vor.u32 %v661_v12, %v658_v20  ;;  %v806_v63 = vunpack.c.l.bf16 %v797_v46  ;;  %v2107_v5 = vpack.c.bf16 %v843_v35, %v842_v30  ;;  %v860_v11 = vshll.u32 %v2065_v23, 16  ;;  %v1650_v46 = vld [vmem:[%s2460_s3 + $0x20] sm:$0xf] }
  0xbf   : > { %v2468_v20 = vunpack.c.l.b16 %v2008_v48  ;;  %v2467_v25 = vunpack.c.l.b16 %v2054_v9  ;;  %v665_v43 = vshrl.u32 %v566_v0, 16  ;;  %v1343_v12 = vsel %vm604_vm2, %v1645_v60, 0 }
  0xc0   : > { %1631 = vmatmul.msk.bf16.vlgmr.msrb.gmra.mxu1 %vm591_vm4, %v1061_v40  ;;  %v663_v39 = vsel %vm637_vm6, %v1970_v56, %v2083_v59  ;;  %v2120_v56 = vsel %vm815_vm5, %v821_v6, %v823_v54  ;;  %v668_v35 = vshll.u32 %v566_v0, 16  ;;  %v957_v40 = vpack.c.bf16 %v952_v3, %v951_v1  ;;  %1352 = vmatpush.bf16.msra.mxu0 %v1343_v12 }
  0xc1   : > { %1617 = vmatmul.msk.bf16.gmra.mxu2 %vm591_vm4, %v663_v39  ;;  %v1448_v30 = vsel %vm604_vm2, %v1650_v46, 0  ;;  %v2123_v39 = vor.u32 %v984_v29, %v981_v45  ;;  %v562_v51 = vmul.f32 %v1990_v7, %v2074_v33  ;;  %v1118_v60 = vmul.f32 %v1883_v27, %v1872_v19 }
  0xc2   : > { %1457 = vmatpush.bf16.msra.mxu1 %v1448_v30  ;;  %v2131_v15 = vrot.slane %v806_v63, 7  ;;  %v1230_v6 = vmul.f32 %v2098_v16, %v1990_v7  ;;  %v862_v0 = vrot.slane %v860_v11, 1  ;;  %v865_v1 = vshll.u32 %v2107_v5, 16 }
  0xc3   : > { %v2140_v3 = vpack.c.b16 %v2467_v25, %v2468_v20  ;;  %v667_v45 = vrot.slane %v665_v43, 3  ;;  %v2142_v29 = vpack.c.bf16 %v1119_v47, %v1118_v60  ;;  %v1384_v19 = vmul.f32 %v1909_v50, %v1951_v28 }
  0xc4   : > { %v670_v63 = vrot.slane %v668_v35, 4  ;;  %v988_v12 = vshrl.u32 %v957_v40, 16  ;;  %v1383_v46 = vmul.f32 %v1883_v27, %v1915_v53  ;;  %v1385_v11 = vmul.f32 %v2060_v17, %v1998_v14 }
  0xc5   : > { %v986_v43 = vsel %vm637_vm6, %v2016_v34, %v2123_v39  ;;  %v991_v30 = vshll.u32 %v957_v40, 16  ;;  %v567_v60 = vpack.c.bf16 %v562_v51, %v562_v51  ;;  %v1386_v50 = vmul.f32 %v2041_v58, %v1981_v62 }
  0xc6   : > { %v2160_v35 = vsel %vm815_vm5, %v823_v54, %v825_v18  ;;  %v858_v27 = vshrl.u32 %v2065_v23, 16  ;;  %v2164_v47 = vrot.slane %v865_v1, 1  ;;  %v1392_v25 = vpack.c.bf16 %v1384_v19, %v1383_v46 }
  0xc7   : > { %v953_v34 = vmul.f32 %v2052_v49, %v1990_v7  ;;  %v2168_v40 = vpack.c.bf16 %v1230_v6, %v1230_v6  ;;  %v845_v51 = vmul.f32 %v2160_v35, %v1981_v62  ;;  %v1393_v20 = vpack.c.bf16 %v1386_v50, %v1385_v11 }
  0xc8   : > { %1615 = vmatmul.msk.bf16.gmra.mxu3 %vm591_vm4, %v2140_v3  ;;  %v2176_v13 = vsel %vm815_vm5, %v827_v22, %v2131_v15  ;;  %v2178_v18 = vor.u32 %v670_v63, %v667_v45  ;;  %v863_v23 = vor.u32 %v862_v0, %v858_v27  ;;  %v1402_v54 = vshll.u32 %v1392_v25, 16 }
  0xc9   : > { %1627 = vmatmul.msk.bf16.gmra.mxu0 %vm591_vm4, %v986_v43  ;;  %v990_v1 = vrot.slane %v988_v12, 3  ;;  %v993_v19 = vrot.slane %v991_v30, 4  ;;  %v674_v46 = vshrl.u32 %v567_v60, 16  ;;  %v1407_v7 = vshll.u32 %v1393_v20, 16 }
  0xca   : > { %v2469_v6 = vunpack.c.l.b16 %v1992_v8  ;;  %v868_v11 = vsel %vm856_vm7, %v863_v23, %v2164_v47  ;;  %v1400_v36 = vshrl.u32 %v1392_v25, 16  ;;  %v1404_v50 = vrot.slane %v1402_v54, 1 }
  0xcb   : > { %v2186_v22 = vpack.c.bf16 %v953_v34, %v953_v34  ;;  %v677_v45 = vshll.u32 %v567_v60, 16  ;;  %v844_v0 = vmul.f32 %v2120_v56, %v1998_v14  ;;  %v1409_v63 = vrot.slane %v1407_v7, 1 }
  0xcc   : > { %v1062_v43 = vpack.c.b16 %v2469_v6, %v582_v32  ;;  %v1389_v12 = vmul.f32 %v2095_v10, %v2052_v49  ;;  %v1405_v30 = vor.u32 %v1404_v50, %v1400_v36  ;;  %v1387_v44 = vmul.f32 %v2120_v56, %v2033_v55 }
  0xcd   : > { %v1388_v32 = vmul.f32 %v2160_v35, %v2074_v33  ;;  %v672_v8 = vsel %vm637_vm6, %v2083_v59, %v2178_v18  ;;  %v2200_v25 = vor.u32 %v993_v19, %v990_v1  ;;  %v2202_v60 = vrot.slane %v674_v46, 3 }
  0xce   : > { %v1124_v27 = vmul.f32 %v2095_v10, %v2074_v33  ;;  %v2207_v34 = vsel %vm856_vm7, %v1405_v30, %v1409_v63  ;;  %v1411_v54 = vshrl.u32 %v1393_v20, 16  ;;  %v1125_v7 = vmul.f32 %v2176_v13, %v2052_v49 }
  0xcf   : > { %v1394_v23 = vpack.c.bf16 %v1388_v32, %v1387_v44  ;;  %v2212_v6 = vrot.slane %v677_v45, 4  ;;  %v2214_v59 = vpack.c.bf16 %v845_v51, %v844_v0  ;;  %v997_v1 = vshrl.u32 %v2186_v22, 16 }
  0xd0   : > { %1632 = vmatmul.msk.bf16.gmra.mxu1 %vm591_vm4, %v1062_v43  ;;  %v1223_v19 = vmul.f32 %v1853_v2, %v1915_v53  ;;  %v1413_v46 = vor.u32 %v1411_v54, %v1409_v63  ;;  %v1130_v36 = vpack.c.bf16 %v1125_v7, %v1124_v27  ;;  %v1224_v20 = vmul.f32 %v1896_v38, %v1951_v28 }
  0xd1   : > { %1618 = vmatmul.msk.bf16.gmra.mxu2 %vm591_vm4, %v672_v8  ;;  %v1415_v43 = vshll.u32 %v1394_v23, 16  ;;  %v1000_v50 = vshll.u32 %v2186_v22, 16  ;;  %v1225_v30 = vmul.f32 %v1900_v41, %v1998_v14  ;;  %v1390_v51 = vmul.f32 %v2098_v16, %v2176_v13 }
  0xd2   : > { %v1231_v45 = vpack.c.bf16 %v1223_v19, %v1893_v37  ;;  %v1158_v44 = vshll.u32 %v1130_v36, 16  ;;  %v1419_v32 = vshrl.u32 %v1394_v23, 16  ;;  %v1126_v2 = vmul.f32 %v2098_v16, %v2131_v15 }
  0xd3   : > { %v1417_v0 = vrot.slane %v1415_v43, 1  ;;  %v1232_v53 = vpack.c.bf16 %v1225_v30, %v1224_v20  ;;  %v2229_v38 = vpack.c.bf16 %v1390_v51, %v1389_v12  ;;  %v995_v41 = vsel %vm637_vm6, %v2123_v39, %v2200_v25 }
  0xd4   : > { %v1239_v63 = vshrl.u32 %v1231_v45, 16  ;;  %v1242_v8 = vshll.u32 %v1231_v45, 16  ;;  %v2237_v22 = vrot.slane %v1158_v44, 1  ;;  %v1131_v27 = vpack.c.bf16 %v1126_v2, %v1126_v2 }
  0xd5   : > { %v2235_v37 = vsel %vm856_vm7, %v1413_v46, %v1417_v0  ;;  %v1247_v16 = vshrl.u32 %v1232_v53, 16  ;;  %v1250_v7 = vshll.u32 %v1232_v53, 16  ;;  %v680_v12 = vor.u32 %v2212_v6, %v2202_v60  ;;  %v393_v53 = vld [vmem:[#allocation2 + $0x2c] sm:$0x1] }
  0xd6   : > { %v1241_v23 = vrot.slane %v1239_v63, 3  ;;  %v1244_v54 = vrot.slane %v1242_v8, 4  ;;  %v1423_v19 = vshll.u32 %v2229_v38, 16  ;;  %v1162_v39 = vshrl.u32 %v1130_v36, 16 }
  0xd7   : > { %v1166_v43 = vshll.u32 %v1131_v27, 16  ;;  %v1249_v46 = vrot.slane %v1247_v16, 3  ;;  %v1252_v20 = vrot.slane %v1250_v7, 4  ;;  %v1421_v30 = vor.u32 %v1419_v32, %v1417_v0 }
  0xd8   : > { %1621 = vmatmul.msk.bf16.vlgmr.msrb.gmra.mxu3 %vm591_vm4, %v868_v11  ;;  %v1226_v45 = vmul.f32 %v1933_v4, %v1981_v62  ;;  %v2246_v11 = vrot.slane %v1423_v19, 1  ;;  %v1164_v51 = vor.u32 %v1162_v39, %v2237_v22  ;;  %v1227_v2 = vmul.f32 %v1973_v57, %v2033_v55 }
  0xd9   : > { %1628 = vmatmul.msk.bf16.gmra.mxu0 %vm591_vm4, %v995_v41  ;;  %v1168_v44 = vrot.slane %v1166_v43, 1  ;;  %v1245_v60 = vor.u32 %v1244_v54, %v1241_v23  ;;  %v1253_v6 = vor.u32 %v1252_v20, %v1249_v46  ;;  %v2470_v36 = vunpack.c.l.b16 %v1961_v31 }
  0xda   : > { %v2471_v0 = vunpack.c.l.b16 %v2008_v48  ;;  %v2257_v4 = vsel %vm856_vm7, %v1421_v30, %v2246_v11  ;;  %v1233_v8 = vpack.c.bf16 %v1227_v2, %v1226_v45  ;;  %v873_v57 = vshll.u32 %v2214_v59, 16 }
  0xdb   : > { %v2260_v63 = vsel %vm856_vm7, %v1164_v51, %v1168_v44  ;;  %v2264_v41 = vsel %vm637_vm6, %v1245_v60, %v1253_v6  ;;  %v394_v27 = vsel %vm392_vm10, 0, %v393_v53  ;;  %v1228_v31 = vmul.f32 %v2002_v21, %v2074_v33 }
  0xdc   : > { %v1063_v32 = vpack.c.b16 %v2471_v0, %v2470_v36  ;;  %v999_v48 = vrot.slane %v997_v1, 3  ;;  %v1256_v23 = vshrl.u32 %v1233_v8, 16  ;;  %v1259_v54 = vshll.u32 %v1233_v8, 16  ;;  %395 = vst [vmem:[#allocation2 + $0x2c] sm:$0x1] %v394_v27 }
  0xdd   : > { %v1274_v16 = vshrl.u32 %v2168_v40, 16  ;;  %v681_v7 = vsel %vm637_vm6, %v2178_v18, %v680_v12  ;;  %v1002_v19 = vrot.slane %v1000_v50, 4  ;;  %v1234_v39 = vpack.c.bf16 %v2068_v24, %v1228_v31 }
  0xde   : > { %v1277_v43 = vshll.u32 %v2168_v40, 16  ;;  %v1121_v46 = vmul.f32 %v2041_v58, %v1998_v14  ;;  %v1258_v21 = vrot.slane %v1256_v23, 3  ;;  %v1261_v1 = vrot.slane %v1259_v54, 4 }
  0xdf   : > { %v1276_v20 = vrot.slane %v1274_v16, 3  ;;  %v1265_v30 = vshrl.u32 %v1234_v39, 16  ;;  %v1268_v45 = vshll.u32 %v1234_v39, 16  ;;  %v869_v44 = vshrl.u32 %v2107_v5, 16 }
  0xe0   : > { %1633 = vmatmul.msk.bf16.gmra.mxu1 %vm591_vm4, %v1063_v32  ;;  %v1279_v51 = vrot.slane %v1277_v43, 4  ;;  %v875_v2 = vrot.slane %v873_v57, 1  ;;  %v1120_v18 = vmul.f32 %v2060_v17, %v1951_v28  ;;  %v1262_v24 = vor.u32 %v1261_v1, %v1258_v21 }
  0xe1   : > { %1619 = vmatmul.msk.bf16.gmra.mxu2 %vm591_vm4, %v681_v7  ;;  %v1003_v50 = vor.u32 %v1002_v19, %v999_v48  ;;  %v1267_v40 = vrot.slane %v1265_v30, 3  ;;  %v1270_v12 = vrot.slane %v1268_v45, 4  ;;  %v871_v14 = vor.u32 %v869_v44, %v2164_v47 }
  0xe2   : > { %v1280_v53 = vor.u32 %v1279_v51, %v1276_v20  ;;  %v1128_v58 = vpack.c.bf16 %v1121_v46, %v1120_v18  ;;  %v2282_v60 = vsel %vm637_vm6, %v1253_v6, %v1262_v24  ;;  %v1137_v5 = vshll.u32 %v2142_v29, 16 }
  0xe3   : > { %v415_v36 = vld [vmem:[#allocation2 + $0x2c] sm:$0x1]  ;;  %v1271_v0 = vor.u32 %v1270_v12, %v1267_v40  ;;  %v876_v32 = vsel %vm856_vm7, %v871_v14, %v875_v2  ;;  %v846_v28 = vmul.f32 %v2095_v10, %v2033_v55  ;;  %v1004_v8 = vsel %vm637_vm6, %v2200_v25, %v1003_v50 }
  0xe4   : > { %v1382_v17 = vunpack.c.l.bf16 %v415_v36  ;;  %v847_v47 = vmul.f32 %v2176_v13, %v2074_v33  ;;  %v1142_v27 = vshll.u32 %v1128_v58, 16  ;;  %v1427_v31 = vshrl.u32 %v2229_v38, 16 }
  0xe5   : > { %v2294_v6 = vsel %vm637_vm6, %v1262_v24, %v1271_v0  ;;  %v2297_v57 = vsel %vm637_vm6, %v1271_v0, %v1280_v53  ;;  %v1060_v48 = vunpack.c.l.b16 %v2045_v61  ;;  %v1139_v23 = vrot.slane %v1137_v5, 1 }
  0xe6   : > { %v1391_v10 = vmul.f32 %v1382_v17, %v2131_v15  ;;  %v852_v54 = vpack.c.bf16 %v847_v47, %v846_v28  ;;  %v1135_v33 = vshrl.u32 %v2142_v29, 16  ;;  %v1144_v13 = vrot.slane %v1142_v27, 1 }
  0xe7   : > { %v1429_v16 = vor.u32 %v1427_v31, %v2246_v11  ;;  %v2472_v19 = vunpack.c.l.b16 %v2054_v9  ;;  %v877_v61 = vshrl.u32 %v2214_v59, 16  ;;  %v1122_v11 = vmul.f32 %v2120_v56, %v1981_v62 }
  0xe8   : > { %1622 = vmatmul.msk.bf16.gmra.mxu3 %vm591_vm4, %v876_v32  ;;  %v1396_v25 = vpack.c.bf16 %v1391_v10, %v1391_v10  ;;  %v1140_v43 = vor.u32 %v1139_v23, %v1135_v33  ;;  %v881_v21 = vshll.u32 %v852_v54, 16  ;;  %v1123_v9 = vmul.f32 %v2160_v35, %v2033_v55 }
  0xe9   : > { %1629 = vmatmul.msk.bf16.gmra.mxu0 %vm591_vm4, %v1004_v8  ;;  %v1064_v39 = vpack.c.b16 %v1060_v48, %v2472_v19  ;;  %v879_v29 = vor.u32 %v877_v61, %v875_v2  ;;  %v848_v51 = vmul.f32 %v2131_v15, %v2052_v49  ;;  %v1146_v59 = vshrl.u32 %v1128_v58, 16 }
  0xea   : > { %v1431_v7 = vshll.u32 %v1396_v25, 16  ;;  %v1145_v38 = vsel %vm856_vm7, %v1140_v43, %v1144_v13  ;;  %v883_v20 = vrot.slane %v881_v21, 1  ;;  %v1129_v45 = vpack.c.bf16 %v1123_v9, %v1122_v11 }
  0xeb   : > { %v853_v2 = vpack.c.bf16 %v848_v51, %v848_v51  ;;  %v1148_v18 = vor.u32 %v1146_v59, %v1144_v13  ;;  %v885_v35 = vshrl.u32 %v852_v54, 16 }
  0xec   : > { %v1433_v46 = vrot.slane %v1431_v7, 1  ;;  %v884_v30 = vsel %vm856_vm7, %v879_v29, %v883_v20  ;;  %v1150_v44 = vshll.u32 %v1129_v45, 16 }
  0xed   : > { %v889_v56 = vshll.u32 %v853_v2, 16  ;;  %v887_v49 = vor.u32 %v885_v35, %v883_v20 }
  0xee   : > { %v1434_v1 = vsel %vm856_vm7, %v1429_v16, %v1433_v46  ;;  %v1152_v62 = vrot.slane %v1150_v44, 1 }
  0xef   : > { %v891_v15 = vrot.slane %v889_v56, 1 }
  0xf0   : > { %1634 = vmatmul.msk.bf16.gmra.mxu1 %vm591_vm4, %v1064_v39  ;;  %v1153_v55 = vsel %vm856_vm7, %v1148_v18, %v1152_v62 }
  0xf1   : > { %1636 = vmatmul.msk.bf16.vlgmr.msra.gmra.mxu2 %vm591_vm4, %v1145_v38  ;;  %v892_v24 = vsel %vm856_vm7, %v887_v49, %v891_v15 }
  0xf8   : > { %1623 = vmatmul.msk.bf16.gmra.mxu3 %vm591_vm4, %v884_v30 }
  0xf9   : > { %1646 = vmatmul.msk.bf16.vlgmr.msra.gmra.mxu0 %vm591_vm4, %v1959_v42  ;;  %v1154_v42 = vshrl.u32 %v1129_v45, 16 }
  0xfb   : > { %v1156_v50 = vor.u32 %v1154_v42, %v1152_v62  ;;  %v2399_v42 = vld [vmem:[%s2461_s4] ss:$0 sm:$0xff] }
 0x100   : > { %1651 = vmatmul.msk.bf16.vlgmr.msra.gmra.mxu1 %vm591_vm4, %v2207_v34  ;;  %v1161_v34 = vsel %vm856_vm7, %v1156_v50, %v2237_v22 }
 0x101   : > { %1637 = vmatmul.msk.bf16.gmra.mxu2 %vm591_vm4, %v1153_v55 }
 0x108   : > { %1624 = vmatmul.msk.bf16.gmra.mxu3 %vm591_vm4, %v892_v24 }
 0x109   : > { %1647 = vmatmul.msk.bf16.gmra.mxu0 %vm591_vm4, %v2014_v26  ;;  %v1337_v26 = vunpack.c.l.b16 %v2071_v52 }
 0x10b   : > { %v1338_v12 = vpack.c.b16 %v1337_v26, %v1060_v48 }
 0x110   : > { %1652 = vmatmul.msk.bf16.gmra.mxu1 %vm591_vm4, %v2235_v37 }
 0x111   : > { %1638 = vmatmul.msk.bf16.gmra.mxu2 %vm591_vm4, %v1161_v34 }
 0x118   : > { %1641 = vmatmul.msk.bf16.vlgmr.msra.gmra.mxu3 %vm591_vm4, %v2264_v41 }
 0x119   : > { %1648 = vmatmul.msk.bf16.gmra.mxu0 %vm591_vm4, %v2140_v3 }
 0x11d   : > { %v617_v40 = vpop.f32.mrf.mxu1 }
 0x120   : > { %1653 = vmatmul.msk.bf16.gmra.mxu1 %vm591_vm4, %v2257_v4 }
 0x121   : > { %1639 = vmatmul.msk.bf16.gmra.mxu2 %vm591_vm4, %v2260_v63 }
 0x125   : > { %v619_v37 = vpop.f32.mrf.mxu1 }
 0x128   : > { %1642 = vmatmul.msk.bf16.gmra.mxu3 %vm591_vm4, %v2282_v60 }
 0x129   : > { %1649 = vmatmul.msk.bf16.gmra.mxu0 %vm591_vm4, %v1338_v12 }
 0x12d   : > { %v622_v22 = vpop.f32.mrf.mxu1 }
 0x130   : > { %1654 = vmatmul.msk.bf16.gmra.mxu1 %vm591_vm4, %v1434_v1 }
 0x134   : > { %v706_v4 = vpop.f32.mrf.mxu2 }
 0x135   : > { %v2348_v3 = vpop.f32.mrf.mxu1  ;;  %v707_v1 = vadd.f32 %v706_v4, %v617_v40 }
 0x136   : > { %v1029_v63 = vpop.f32.mrf.mxu0 }
 0x138   : > { %1643 = vmatmul.msk.bf16.gmra.mxu3 %vm591_vm4, %v2294_v6 }
 0x13b   : > { %v2352_v41 = vpop.f32.mrf.mxu3 }
 0x13c   : > { %v708_v53 = vpop.f32.mrf.mxu2 }
 0x13d   : > { %v1089_v52 = vpop.f32.mrf.mxu1  ;;  %v709_v51 = vadd.f32 %v708_v53, %v619_v37 }
 0x13e   : > { %v1031_v58 = vpop.f32.mrf.mxu0 }
 0x143   : > { %v2354_v14 = vpop.f32.mrf.mxu3 }
 0x144   : > { %v711_v0 = vpop.f32.mrf.mxu2 }
 0x145   : > { %v1091_v60 = vpop.f32.mrf.mxu1  ;;  %v712_v49 = vadd.f32 %v711_v0, %v622_v22 }
 0x146   : > { %v1034_v32 = vpop.f32.mrf.mxu0 }
 0x148   : > { %1644 = vmatmul.msk.bf16.gmra.mxu3 %vm591_vm4, %v2297_v57 }
 0x14b   : > { %v2358_v36 = vpop.f32.mrf.mxu3 }
 0x14c   : > { %v713_v17 = vpop.f32.mrf.mxu2 }
 0x14d   : > { %v1094_v28 = vpop.f32.mrf.mxu1 }
 0x14e   : > { %v2362_v47 = vpop.f32.mrf.mxu0 }
 0x153   : > { %v2360_v5 = vpop.f32.mrf.mxu3 }
 0x154   : > { %v2366_v27 = vpop.f32.mrf.mxu2 }
 0x155   : > { %v2364_v6 = vpop.f32.mrf.mxu1 }
 0x156   : > { %v2368_v31 = vpop.f32.mrf.mxu0 }
 0x15b   : > { %v917_v8 = vpop.f32.mrf.mxu3 }
 0x15c   : > { %v2372_v48 = vpop.f32.mrf.mxu2  ;;  %v937_v11 = vadd.f32 %v917_v8, %v707_v1 }
 0x15d   : > { %v2370_v57 = vpop.f32.mrf.mxu1 }
 0x15e   : > { %v2374_v25 = vpop.f32.mrf.mxu0  ;;  %v1049_v45 = vadd.f32 %v1029_v63, %v937_v11 }
 0x160   : > { %v1109_v44 = vadd.f32 %v1089_v52, %v1049_v45 }
 0x163   : > { %v919_v10 = vpop.f32.mrf.mxu3 }
 0x164   : > { %v2378_v13 = vpop.f32.mrf.mxu2  ;;  %v938_v59 = vadd.f32 %v919_v10, %v709_v51 }
 0x165   : > { %v2376_v54 = vpop.f32.mrf.mxu1 }
 0x166   : > { %v2380_v16 = vpop.f32.mrf.mxu0  ;;  %v1050_v55 = vadd.f32 %v1031_v58, %v938_v59  ;;  %v714_v58 = vadd.f32 %v713_v17, %v2348_v3  ;;  %v717_v3 = vadd.f32 %v2366_v27, %v2352_v41  ;;  %v719_v41 = vadd.f32 %v2372_v48, %v2354_v14 }
 0x168   : > { %v1110_v34 = vadd.f32 %v1091_v60, %v1050_v55 }
 0x16b   : > { %v922_v23 = vpop.f32.mrf.mxu3 }
 0x16c   : > { %v2384_v39 = vpop.f32.mrf.mxu2  ;;  %v939_v50 = vadd.f32 %v922_v23, %v712_v49 }
 0x16d   : > { %v2382_v19 = vpop.f32.mrf.mxu1 }
 0x16e   : > { %v2388_v46 = vpop.f32.mrf.mxu0  ;;  %v1051_v63 = vadd.f32 %v1034_v32, %v939_v50 }
 0x170   : > { %v1111_v23 = vadd.f32 %v1094_v28, %v1051_v63 }
 0x173   : > { %v924_v33 = vpop.f32.mrf.mxu3 }
 0x174   : > { %v1194_v61 = vpop.f32.mrf.mxu2  ;;  %v940_v10 = vadd.f32 %v924_v33, %v714_v58 }
 0x175   : > { %v2390_v38 = vpop.f32.mrf.mxu1  ;;  %v1214_v18 = vadd.f32 %v1194_v61, %v1109_v44 }
 0x176   : > { %v1354_v29 = vpop.f32.mrf.mxu0  ;;  %v1052_v11 = vadd.f32 %v2362_v47, %v940_v10 }
 0x178   : > { %v1112_v59 = vadd.f32 %v2364_v6, %v1052_v11 }
 0x17b   : > { %v927_v7 = vpop.f32.mrf.mxu3 }
 0x17c   : > { %v1196_v20 = vpop.f32.mrf.mxu2  ;;  %v941_v28 = vadd.f32 %v927_v7, %v717_v3 }
 0x17d   : > { %v1459_v9 = vpop.f32.mrf.mxu1  ;;  %v1215_v26 = vadd.f32 %v1196_v20, %v1110_v34 }
 0x17e   : > { %v1356_v2 = vpop.f32.mrf.mxu0 }
 0x183   : > { %v2386_v43 = vpop.f32.mrf.mxu3 }
 0x184   : > { %v1199_v15 = vpop.f32.mrf.mxu2  ;;  %v942_v6 = vadd.f32 %v2386_v43, %v719_v41 }
 0x185   : > { %v1461_v62 = vpop.f32.mrf.mxu1  ;;  %v1216_v61 = vadd.f32 %v1199_v15, %v1111_v23 }
 0x186   : > { %v1359_v12 = vpop.f32.mrf.mxu0 }
 0x18b   : > { %v2392_v21 = vpop.f32.mrf.mxu3 }
 0x18c   : > { %v1201_v8 = vpop.f32.mrf.mxu2 }
 0x18d   : > { %v1464_v22 = vpop.f32.mrf.mxu1 }
 0x18e   : > { %v1361_v45 = vpop.f32.mrf.mxu0 }
 0x193   : > { %v2394_v30 = vpop.f32.mrf.mxu3 }
 0x195   : > { %v1466_v33 = vpop.f32.mrf.mxu1 }
 0x196   : > { %v1364_v15 = vpop.f32.mrf.mxu0 }
 0x19b   : > { %v1306_v56 = vpop.f32.mrf.mxu3 }
 0x19c   : > { %v1326_v35 = vadd.f32 %v1306_v56, %v1214_v18  ;;  %v1217_v18 = vadd.f32 %v1201_v8, %v1112_v59  ;;  %v1053_v56 = vadd.f32 %v2368_v31, %v941_v28 }
 0x19d   : > { %v1469_v50 = vpop.f32.mrf.mxu1 }
 0x19e   : > { %v1374_v24 = vadd.f32 %v1354_v29, %v1326_v35  ;;  %v1113_v49 = vadd.f32 %v2370_v57, %v1053_v56 }
 0x1a0   : > { %v1479_v40 = vadd.f32 %v1459_v9, %v1374_v24 }
 0x1a2   : > { %v1491_v37 = vadd.f32 %v2399_v42, %v1479_v40 }
 0x1a3   : > { %v1308_v4 = vpop.f32.mrf.mxu3 }
 0x1a4   : > { %v1499_v52 = vmax.f32 %v1491_v37, 0.0  ;;  %v1327_v53 = vadd.f32 %v1308_v4, %v1215_v26  ;;  %v1054_v37 = vadd.f32 %v2374_v25, %v942_v6 }
 0x1a5   : > { %v1471_v25 = vpop.f32.mrf.mxu1 }
 0x1a6   : > { %v1507_v60 = vpack.c.bf16 %v1499_v52, %v1499_v52  ;;  %v1375_v0 = vadd.f32 %v1356_v2, %v1327_v53  ;;  %v1204_v2 = vpop.f32.mrf.mxu2  ;;  %v1114_v63 = vadd.f32 %v2376_v54, %v1054_v37  ;;  %v1366_v53 = vpop.f32.mrf.mxu0 }
 0x1a7   : > { %v1218_v34 = vadd.f32 %v1204_v2, %v1113_v49 }
 0x1a8   : > { %1515 = vst.msk [vmem:[%s2407_s27] sm:$0xf] %vm378_vm1, %v1507_v60  ;;  %v1480_v32 = vadd.f32 %v1461_v62, %v1375_v0 }
 0x1aa   : > { %v1492_v1 = vadd.f32 %v2399_v42, %v1480_v32 }
 0x1ab   : > { %v1311_v29 = vpop.f32.mrf.mxu3 }
 0x1ac   : > { %v1500_v9 = vmax.f32 %v1492_v1, 0.0  ;;  %v1328_v20 = vadd.f32 %v1311_v29, %v1216_v61 }
 0x1ae   : > { %v1508_v17 = vpack.c.bf16 %v1500_v9, %v1500_v9  ;;  %v1376_v51 = vadd.f32 %v1359_v12, %v1328_v20  ;;  %v1206_v40 = vpop.f32.mrf.mxu2  ;;  %v722_v12 = vadd.f32 %v2378_v13, %v2358_v36 }
 0x1b0   : > { %1516 = vst.msk [vmem:[%s2407_s27 + $0x4] sm:$0xf] %vm378_vm1, %v1508_v17  ;;  %v1481_v44 = vadd.f32 %v1464_v22, %v1376_v51  ;;  %v943_v57 = vadd.f32 %v2392_v21, %v722_v12  ;;  %v1219_v22 = vadd.f32 %v1206_v40, %v1114_v63  ;;  %v724_v21 = vadd.f32 %v2384_v39, %v2360_v5  ;;  %v1474_v5 = vpop.f32.mrf.mxu1 }
 0x1b2   : > { %v1493_v47 = vadd.f32 %v2399_v42, %v1481_v44  ;;  %v1055_v0 = vadd.f32 %v2380_v16, %v943_v57  ;;  %v944_v23 = vadd.f32 %v2394_v30, %v724_v21  ;;  %v1369_v16 = vpop.f32.mrf.mxu0 }
 0x1b3   : > { %v1313_v62 = vpop.f32.mrf.mxu3 }
 0x1b4   : > { %v1501_v55 = vmax.f32 %v1493_v47, 0.0  ;;  %v1329_v35 = vadd.f32 %v1313_v62, %v1217_v18  ;;  %v1115_v32 = vadd.f32 %v2382_v19, %v1055_v0  ;;  %v1056_v9 = vadd.f32 %v2388_v46, %v944_v23 }
 0x1b6   : > { %v1509_v27 = vpack.c.bf16 %v1501_v55, %v1501_v55  ;;  %v1377_v7 = vadd.f32 %v1361_v45, %v1329_v35  ;;  %v1209_v13 = vpop.f32.mrf.mxu2  ;;  %v1116_v17 = vadd.f32 %v2390_v38, %v1056_v9 }
 0x1b7   : > { %v1220_v1 = vadd.f32 %v1209_v13, %v1115_v32 }
 0x1b8   : > { %1517 = vst.msk [vmem:[%s2407_s27 + $0x8] sm:$0xf] %vm378_vm1, %v1509_v27  ;;  %v1482_v24 = vadd.f32 %v1466_v33, %v1377_v7  ;;  %v1476_v47 = vpop.f32.mrf.mxu1 }
 0x1ba   : > { %v1494_v31 = vadd.f32 %v2399_v42, %v1482_v24  ;;  %v1371_v46 = vpop.f32.mrf.mxu0 }
 0x1bb   : > { %v1316_v26 = vpop.f32.mrf.mxu3 }
 0x1bc   : > { %v1502_v14 = vmax.f32 %v1494_v31, 0.0  ;;  %v1330_v48 = vadd.f32 %v1316_v26, %v1218_v34 }
 0x1be   : > { %v1510_v43 = vpack.c.bf16 %v1502_v14, %v1502_v14  ;;  %v1378_v4 = vadd.f32 %v1364_v15, %v1330_v48  ;;  %v1211_v30 = vpop.f32.mrf.mxu2 }
 0x1bf   : > { %v1221_v51 = vadd.f32 %v1211_v30, %v1116_v17 }
 0x1c0   : > { %1518 = vst.msk [vmem:[%s2407_s27 + $0xc] sm:$0xf] %vm378_vm1, %v1510_v43  ;;  %v1483_v52 = vadd.f32 %v1469_v50, %v1378_v4 }
 0x1c2   : > { %v1495_v58 = vadd.f32 %v2399_v42, %v1483_v52 }
 0x1c3   : > { %v1318_v60 = vpop.f32.mrf.mxu3 }
 0x1c4   : > { %v1503_v8 = vmax.f32 %v1495_v58, 0.0  ;;  %v1331_v36 = vadd.f32 %v1318_v60, %v1219_v22 }
 0x1c6   : > { %v1511_v10 = vpack.c.bf16 %v1503_v8, %v1503_v8  ;;  %v1379_v54 = vadd.f32 %v1366_v53, %v1331_v36 }
 0x1c8   : > { %1519 = vst.msk [vmem:[%s2407_s27 + $0x10] sm:$0xf] %vm378_vm1, %v1511_v10  ;;  %v1484_v61 = vadd.f32 %v1471_v25, %v1379_v54 }
 0x1ca   : > { %v1496_v29 = vadd.f32 %v2399_v42, %v1484_v61 }
 0x1cb   : > { %v1321_v11 = vpop.f32.mrf.mxu3 }
 0x1cc   : > { %v1504_v20 = vmax.f32 %v1496_v29, 0.0  ;;  %v1332_v45 = vadd.f32 %v1321_v11, %v1220_v1 }
 0x1ce   : > { %v1512_v39 = vpack.c.bf16 %v1504_v20, %v1504_v20  ;;  %v1380_v3 = vadd.f32 %v1369_v16, %v1332_v45 }
 0x1d0   : > { %1520 = vst.msk [vmem:[%s2407_s27 + $0x14] sm:$0xf] %vm378_vm1, %v1512_v39  ;;  %v1485_v19 = vadd.f32 %v1474_v5, %v1380_v3 }
 0x1d2   : > { %v1497_v33 = vadd.f32 %v2399_v42, %v1485_v19 }
 0x1d3   : > { %v1323_v28 = vpop.f32.mrf.mxu3 }
 0x1d4   : > { %v1505_v59 = vmax.f32 %v1497_v33, 0.0  ;;  %v1333_v44 = vadd.f32 %v1323_v28, %v1221_v51 }
 0x1d6   : > { %v1513_v2 = vpack.c.bf16 %v1505_v59, %v1505_v59  ;;  %v1381_v18 = vadd.f32 %v1371_v46, %v1333_v44 }
 0x1d8   : > { %1521 = vst.msk [vmem:[%s2407_s27 + $0x18] sm:$0xf] %vm378_vm1, %v1513_v2  ;;  %v1486_v62 = vadd.f32 %v1476_v47, %v1381_v18 }
 0x1da   : > { %v1498_v56 = vadd.f32 %v2399_v42, %v1486_v62 }
 0x1dc   : > { %v1506_v38 = vmax.f32 %v1498_v56, 0.0 }
 0x1de   : > { %v1514_v55 = vpack.c.bf16 %v1506_v38, %v1506_v38 }
 0x1e0   : > { %1522 = vst.msk [vmem:[%s2407_s27 + $0x1c] sm:$0xf] %vm378_vm1, %v1514_v55 }
 0x1e1 PF: > { %s17_s24 = sadd.s32 1, %s1687_s24  }
 0x1e2   : > { %p14_p4 = scmp.ge.s32.totalorder %s17_s24, 4  }
 0x1e4   :  { %16 = sbr.rel (!%p14_p4) target bundleno = 1 (0x1), region = 86 }

</bundles_post_ra>
